<compile_context>
chip_gen: v6e
topology: v6e:2x2x1
jax: 0.10.0
libtpu: 0.0.40
codegen_flags: <defaults>
</compile_context>

<pallas_src>
import jax
import jax.numpy as jnp
import numpy as np
from jax.experimental import pallas as pl
from jax.experimental.pallas import tpu as pltpu

LANES = 128  # lane width / padded label dim

# Row indices inside the packed bias/gain slab.
(ROW_BN_G, ROW_BN_B, ROW_B_T, ROW_LN_T_G, ROW_LN_T_B,
 ROW_B_P1, ROW_LN_P_G, ROW_LN_P_B, ROW_B_IH, ROW_B_HH, ROW_B_P2,
 N_VEC_ROWS) = range(12)


# -----------------------------------------------------------------------------------
# Fused kernel: BN -> Linear+LN -> GRU (unrolled over T) -> Linear+LN+GELU+Linear
# Operands: x (B,T,H), packed weights (H, 2H+6H+Lp), packed vectors (11, VW).
# -----------------------------------------------------------------------------------
def rnn_fused_kernel(x_ref, w_ref, v_ref, o_ref):
    B, T, H = x_ref.shape
    H3 = 3 * H
    Lp = o_ref.shape[1]

    # ---- unpack the two packed slabs with static slices (one-time cost) ----
    W = w_ref[...]                       # (H, 2H + 2*3H + Lp)
    V = v_ref[...]                       # (N_VEC_ROWS, VW)

    c = 0
    w_t = W[:, c:c + H];   c += H        # transform Linear
    w_p1 = W[:, c:c + H];  c += H        # predict Linear #1
    w_ih = W[:, c:c + H3]; c += H3       # GRU input-projection, gates [r|z|n]
    w_hh = W[:, c:c + H3]; c += H3       # GRU recurrent weights, gates [r|z|n]
    w_p2 = W[:, c:c + Lp]                # predict Linear #2 (lane-padded)

    bn_g = V[ROW_BN_G:ROW_BN_G + 1, :H]
    bn_b = V[ROW_BN_B:ROW_BN_B + 1, :H]
    b_t = V[ROW_B_T:ROW_B_T + 1, :H]
    ln_t_g = V[ROW_LN_T_G:ROW_LN_T_G + 1, :H]
    ln_t_b = V[ROW_LN_T_B:ROW_LN_T_B + 1, :H]
    b_p1 = V[ROW_B_P1:ROW_B_P1 + 1, :H]
    ln_p_g = V[ROW_LN_P_G:ROW_LN_P_G + 1, :H]
    ln_p_b = V[ROW_LN_P_B:ROW_LN_P_B + 1, :H]
    b_ih = V[ROW_B_IH:ROW_B_IH + 1, :H3]
    b_hh = V[ROW_B_HH:ROW_B_HH + 1, :H3]
    b_p2 = V[ROW_B_P2:ROW_B_P2 + 1, :Lp]

    # ---- BatchNorm1d: training-mode batch stats over the B*T rows, per feature ----
    x = x_ref[...].reshape(B * T, H)                      # H stays on the lane axis
    mu = jnp.mean(x, axis=0, keepdims=True)
    var = jnp.mean((x - mu) ** 2, axis=0, keepdims=True)  # biased var (PyTorch BN fwd)
    xn = (x - mu) * jax.lax.rsqrt(var + 1e-5) * bn_g + bn_b

    # ---- transform: Linear + LayerNorm ----
    y = jnp.dot(xn, w_t, preferred_element_type=jnp.float32) + b_t
    m = jnp.mean(y, axis=-1, keepdims=True)
    v = jnp.mean((y - m) ** 2, axis=-1, keepdims=True)
    y2 = (y - m) * jax.lax.rsqrt(v + 1e-5) * ln_t_g + ln_t_b        # (B*T, H)

    # ---- GRU input projection, hoisted & gate-fused: ONE (B*T,H)@(H,3H) matmul ----
    xg = jnp.dot(y2, w_ih, preferred_element_type=jnp.float32) + b_ih   # (B*T, 3H)
    xg = xg.reshape(B, T, H3)
    # Pre-extract per-timestep slabs; they do not depend on h, so they stay off
    # the serial recurrence chain.
    xg_t = [xg[:, t, :] for t in range(T)]                              # T x (B, 3H)

    # ---- GRU recurrence: fully unrolled, one fused matmul + one shared tanh/step ----
    h = jnp.zeros((B, H), jnp.float32)
    for t in range(T):
        hg = jnp.dot(h, w_hh, preferred_element_type=jnp.float32) + b_hh   # (B, 3H)
        # sigmoid(x) == 0.5*(1+tanh(0.5*x)); r and z share one EUP tanh.
        rz = 0.5 * (1.0 + jnp.tanh(0.5 * (xg_t[t][:, :2 * H] + hg[:, :2 * H])))
        r = rz[:, :H]
        z = rz[:, H:]
        n = jnp.tanh(xg_t[t][:, 2 * H:] + r * hg[:, 2 * H:])   # b_hn inside r*(.)
        h = (1.0 - z) * n + z * h

    # ---- predict head: Linear -> LayerNorm -> GELU(exact, erf) -> Linear ----
    y = jnp.dot(h, w_p1, preferred_element_type=jnp.float32) + b_p1
    m = jnp.mean(y, axis=-1, keepdims=True)
    v = jnp.mean((y - m) ** 2, axis=-1, keepdims=True)
    yn = (y - m) * jax.lax.rsqrt(v + 1e-5) * ln_p_g + ln_p_b
    ge = 0.5 * yn * (1.0 + jax.lax.erf(yn * jnp.float32(0.7071067811865476)))
    o_ref[...] = jnp.dot(ge, w_p2, preferred_element_type=jnp.float32) + b_p2


# -----------------------------------------------------------------------------------
# One-time parameter packing (hoisted out of the per-call forward path).
# -----------------------------------------------------------------------------------
def prepare_params(p, num_labels):
    H = p["w_t"].shape[0]
    H3 = 3 * H
    L_pad = max(LANES, ((num_labels + LANES - 1) // LANES) * LANES)
    VW = max(L_pad, H3, LANES)

    w_ih_cat = jnp.concatenate([p["w_ih"][g] for g in range(3)], axis=1)   # (H, 3H)
    w_hh_cat = jnp.concatenate([p["w_hh"][g] for g in range(3)], axis=1)   # (H, 3H)
    b_ih_cat = jnp.concatenate([p["b_ih"][g] for g in range(3)], axis=1)   # (1, 3H)
    b_hh_cat = jnp.concatenate([p["b_hh"][g] for g in range(3)], axis=1)   # (1, 3H)

    w_p2_pad = jnp.zeros((H, L_pad), jnp.float32).at[:, :num_labels].set(p["w_p2"])
    b_p2_pad = jnp.zeros((1, L_pad), jnp.float32).at[:, :num_labels].set(p["b_p2"])

    # Packed weight slab: [w_t | w_p1 | w_ih_cat | w_hh_cat | w_p2_pad]
    w_all = jnp.concatenate(
        [p["w_t"], p["w_p1"], w_ih_cat, w_hh_cat, w_p2_pad], axis=1)        # (H, 8H+Lp)

    # Packed bias/gain slab.
    vecs = jnp.zeros((N_VEC_ROWS, VW), jnp.float32)
    def put(vrows, row, val):
        return vrows.at[row, :val.shape[1]].set(val[0])
    vecs = put(vecs, ROW_BN_G, p["bn_g"])
    vecs = put(vecs, ROW_BN_B, p["bn_b"])
    vecs = put(vecs, ROW_B_T, p["b_t"])
    vecs = put(vecs, ROW_LN_T_G, p["ln_t_g"])
    vecs = put(vecs, ROW_LN_T_B, p["ln_t_b"])
    vecs = put(vecs, ROW_B_P1, p["b_p1"])
    vecs = put(vecs, ROW_LN_P_G, p["ln_p_g"])
    vecs = put(vecs, ROW_LN_P_B, p["ln_p_b"])
    vecs = put(vecs, ROW_B_IH, b_ih_cat)
    vecs = put(vecs, ROW_B_HH, b_hh_cat)
    vecs = put(vecs, ROW_B_P2, b_p2_pad)
    return w_all, vecs


# -----------------------------------------------------------------------------------
# Forward wrapper: exactly one pallas_call with 3 operands, plus a final slice.
# -----------------------------------------------------------------------------------
def rnn_model_forward(x, w_all, vecs, num_labels):
    B, T, H = x.shape
    L_pad = w_all.shape[1] - 8 * H            # packed layout: 2H + 6H + L_pad

    logits_pad = pl.pallas_call(
        rnn_fused_kernel,
        out_shape=jax.ShapeDtypeStruct((B, L_pad), jnp.float32),
        compiler_params=pltpu.CompilerParams(vmem_limit_bytes=32 * 1024 * 1024),
    )(x, w_all, vecs)
    return logits_pad[:, :num_labels]


# -----------------------------------------------------------------------------------
# Pure-JAX reference (same math, unpacked params) for the correctness check
# -----------------------------------------------------------------------------------
def reference_forward(x, p):
    B, T, H = x.shape
    xf = x.reshape(B * T, H)
    mu = xf.mean(0, keepdims=True)
    var = ((xf - mu) ** 2).mean(0, keepdims=True)
    xn = (xf - mu) / jnp.sqrt(var + 1e-5) * p["bn_g"] + p["bn_b"]
    y = xn @ p["w_t"] + p["b_t"]
    m = y.mean(-1, keepdims=True)
    v = ((y - m) ** 2).mean(-1, keepdims=True)
    y = (y - m) / jnp.sqrt(v + 1e-5) * p["ln_t_g"] + p["ln_t_b"]
    xt = y.reshape(B, T, H).transpose(1, 0, 2)               # (T, B, H)

    def step(h, x_t):
        r = jax.nn.sigmoid(x_t @ p["w_ih"][0] + p["b_ih"][0] + h @ p["w_hh"][0] + p["b_hh"][0])
        z = jax.nn.sigmoid(x_t @ p["w_ih"][1] + p["b_ih"][1] + h @ p["w_hh"][1] + p["b_hh"][1])
        n = jnp.tanh(x_t @ p["w_ih"][2] + p["b_ih"][2] + r * (h @ p["w_hh"][2] + p["b_hh"][2]))
        return (1.0 - z) * n + z * h, None

    h, _ = jax.lax.scan(step, jnp.zeros((B, H), jnp.float32), xt)
    y = h @ p["w_p1"] + p["b_p1"]
    m = y.mean(-1, keepdims=True)
    v = ((y - m) ** 2).mean(-1, keepdims=True)
    yn = (y - m) / jnp.sqrt(v + 1e-5) * p["ln_p_g"] + p["ln_p_b"]
    ge = 0.5 * yn * (1.0 + jax.lax.erf(yn / jnp.sqrt(2.0)))
    return ge @ p["w_p2"] + p["b_p2"]


if __name__ == "__main__":
    B, T, H = 2, 8, 32
    NUM_LABELS = 6          # stand-in for len(label2idx)

    key = jax.random.PRNGKey(0)
    ks = jax.random.split(key, 12)

    def rnd(k, shape, scale=0.1):
        return (scale * jax.random.normal(k, shape)).astype(jnp.float32)

    params = {
        # BatchNorm1d(data_size == H)
        "bn_g": jnp.ones((1, H), jnp.float32),
        "bn_b": jnp.zeros((1, H), jnp.float32),
        # transform: Linear(H,H) + LayerNorm(H)
        "w_t": rnd(ks[0], (H, H)),
        "b_t": rnd(ks[1], (1, H)),
        "ln_t_g": jnp.ones((1, H), jnp.float32),
        "ln_t_b": jnp.zeros((1, H), jnp.float32),
        # GRU(H,H), gate order [r | z | n], stored transposed per gate: (3, H, H)
        "w_ih": rnd(ks[2], (3, H, H)),
        "w_hh": rnd(ks[3], (3, H, H)),
        "b_ih": rnd(ks[4], (3, 1, H)),
        "b_hh": rnd(ks[5], (3, 1, H)),
        # predict: Linear(H,H) + LayerNorm(H) + GELU + Linear(H, num_labels)
        "w_p1": rnd(ks[6], (H, H)),
        "b_p1": rnd(ks[7], (1, H)),
        "ln_p_g": jnp.ones((1, H), jnp.float32),
        "ln_p_b": jnp.zeros((1, H), jnp.float32),
        "w_p2": rnd(ks[8], (H, NUM_LABELS)),
        "b_p2": rnd(ks[9], (1, NUM_LABELS)),
    }

    x = jax.random.normal(ks[10], (B, T, H), dtype=jnp.float32)

    # One-time packing (not on the per-call path).
    w_all, vecs = prepare_params(params, NUM_LABELS)
    w_all = jax.block_until_ready(w_all)
    vecs = jax.block_until_ready(vecs)

    fwd = jax.jit(rnn_model_forward, static_argnums=(3,))
    out = jax.block_until_ready(fwd(x, w_all, vecs, NUM_LABELS))
    ref = jax.block_until_ready(reference_forward(x, params))

    assert out.shape == (B, NUM_LABELS)
    np.testing.assert_allclose(np.asarray(out), np.asarray(ref), rtol=1e-4, atol=1e-4)
    print("KERNEL_OK")
</pallas_src>

<mosaic_0001>
module attributes {stable_mosaic.version = 11 : i64} {
  func.func @rnn_fused_kernel(%arg0: memref<2x8x32xf32, #tpu.memory_space<vmem>>, %arg1: memref<32x384xf32, #tpu.memory_space<vmem>>, %arg2: memref<11x128xf32, #tpu.memory_space<vmem>>, %arg3: memref<2x128xf32, #tpu.memory_space<vmem>>) attributes {dimension_semantics = [], scalar_prefetch = 0 : i64, scratch_operands = 0 : i64, tpu.core_type = #tpu.core_type<tc>} {
    %c0 = arith.constant 0 : index
    %c0_0 = arith.constant 0 : index
    %0 = vector.load %arg1[%c0, %c0_0] : memref<32x384xf32, #tpu.memory_space<vmem>>, vector<32x384xf32>
    %c0_1 = arith.constant 0 : index
    %c0_2 = arith.constant 0 : index
    %1 = vector.load %arg2[%c0_1, %c0_2] : memref<11x128xf32, #tpu.memory_space<vmem>>, vector<11x128xf32>
    %2 = vector.extract_strided_slice %0 {offsets = [0, 0], sizes = [32, 32], strides = [1, 1]} : vector<32x384xf32> to vector<32x32xf32>
    %3 = vector.extract_strided_slice %0 {offsets = [0, 32], sizes = [32, 32], strides = [1, 1]} : vector<32x384xf32> to vector<32x32xf32>
    %4 = vector.extract_strided_slice %0 {offsets = [0, 64], sizes = [32, 96], strides = [1, 1]} : vector<32x384xf32> to vector<32x96xf32>
    %5 = vector.extract_strided_slice %0 {offsets = [0, 160], sizes = [32, 96], strides = [1, 1]} : vector<32x384xf32> to vector<32x96xf32>
    %6 = vector.extract_strided_slice %0 {offsets = [0, 256], sizes = [32, 128], strides = [1, 1]} : vector<32x384xf32> to vector<32x128xf32>
    %7 = vector.extract_strided_slice %1 {offsets = [0, 0], sizes = [1, 32], strides = [1, 1]} : vector<11x128xf32> to vector<1x32xf32>
    %8 = vector.extract_strided_slice %1 {offsets = [1, 0], sizes = [1, 32], strides = [1, 1]} : vector<11x128xf32> to vector<1x32xf32>
    %9 = vector.extract_strided_slice %1 {offsets = [2, 0], sizes = [1, 32], strides = [1, 1]} : vector<11x128xf32> to vector<1x32xf32>
    %10 = vector.extract_strided_slice %1 {offsets = [3, 0], sizes = [1, 32], strides = [1, 1]} : vector<11x128xf32> to vector<1x32xf32>
    %11 = vector.extract_strided_slice %1 {offsets = [4, 0], sizes = [1, 32], strides = [1, 1]} : vector<11x128xf32> to vector<1x32xf32>
    %12 = vector.extract_strided_slice %1 {offsets = [5, 0], sizes = [1, 32], strides = [1, 1]} : vector<11x128xf32> to vector<1x32xf32>
    %13 = vector.extract_strided_slice %1 {offsets = [6, 0], sizes = [1, 32], strides = [1, 1]} : vector<11x128xf32> to vector<1x32xf32>
    %14 = vector.extract_strided_slice %1 {offsets = [7, 0], sizes = [1, 32], strides = [1, 1]} : vector<11x128xf32> to vector<1x32xf32>
    %15 = vector.extract_strided_slice %1 {offsets = [8, 0], sizes = [1, 96], strides = [1, 1]} : vector<11x128xf32> to vector<1x96xf32>
    %16 = vector.extract_strided_slice %1 {offsets = [9, 0], sizes = [1, 96], strides = [1, 1]} : vector<11x128xf32> to vector<1x96xf32>
    %17 = vector.extract_strided_slice %1 {offsets = [10, 0], sizes = [1, 128], strides = [1, 1]} : vector<11x128xf32> to vector<1x128xf32>
    %c0_3 = arith.constant 0 : index
    %c0_4 = arith.constant 0 : index
    %c0_5 = arith.constant 0 : index
    %18 = vector.load %arg0[%c0_3, %c0_4, %c0_5] : memref<2x8x32xf32, #tpu.memory_space<vmem>>, vector<2x8x32xf32>
    %19 = vector.shape_cast %18 : vector<2x8x32xf32> to vector<16x32xf32>
    %cst = arith.constant dense<0.000000e+00> : vector<32xf32>
    %20 = vector.multi_reduction <add>, %19, %cst [0] : vector<16x32xf32> to vector<32xf32>
    %21 = vector.shape_cast %20 : vector<32xf32> to vector<1x32xf32>
    %cst_6 = arith.constant 1.600000e+01 : f32
    %22 = vector.broadcast %cst_6 : f32 to vector<1x32xf32>
    %23 = arith.divf %21, %22 : vector<1x32xf32>
    %24 = vector.broadcast %23 : vector<1x32xf32> to vector<16x32xf32>
    %25 = arith.subf %19, %24 : vector<16x32xf32>
    %26 = arith.mulf %25, %25 : vector<16x32xf32>
    %cst_7 = arith.constant dense<0.000000e+00> : vector<32xf32>
    %27 = vector.multi_reduction <add>, %26, %cst_7 [0] : vector<16x32xf32> to vector<32xf32>
    %28 = vector.shape_cast %27 : vector<32xf32> to vector<1x32xf32>
    %cst_8 = arith.constant 1.600000e+01 : f32
    %29 = vector.broadcast %cst_8 : f32 to vector<1x32xf32>
    %30 = arith.divf %28, %29 : vector<1x32xf32>
    %31 = vector.broadcast %23 : vector<1x32xf32> to vector<16x32xf32>
    %32 = arith.subf %19, %31 : vector<16x32xf32>
    %cst_9 = arith.constant 9.99999974E-6 : f32
    %33 = vector.broadcast %cst_9 : f32 to vector<1x32xf32>
    %34 = arith.addf %30, %33 : vector<1x32xf32>
    %35 = math.rsqrt %34 : vector<1x32xf32>
    %36 = vector.broadcast %35 : vector<1x32xf32> to vector<16x32xf32>
    %37 = arith.mulf %32, %36 : vector<16x32xf32>
    %38 = vector.broadcast %7 : vector<1x32xf32> to vector<16x32xf32>
    %39 = arith.mulf %37, %38 : vector<16x32xf32>
    %40 = vector.broadcast %8 : vector<1x32xf32> to vector<16x32xf32>
    %41 = arith.addf %39, %40 : vector<16x32xf32>
    %cst_10 = arith.constant dense<0.000000e+00> : vector<16x32xf32>
    %42 = tpu.matmul %41, %2, %cst_10 {dimension_numbers = #tpu.dot_dimension_numbers<[1], [0], [0], [1], [0, 0, 1, 1], [], []>} : vector<16x32xf32>, vector<32x32xf32>, vector<16x32xf32> -> vector<16x32xf32>
    %43 = vector.broadcast %9 : vector<1x32xf32> to vector<16x32xf32>
    %44 = arith.addf %42, %43 : vector<16x32xf32>
    %cst_11 = arith.constant dense<0.000000e+00> : vector<16xf32>
    %45 = vector.multi_reduction <add>, %44, %cst_11 [1] : vector<16x32xf32> to vector<16xf32>
    %46 = vector.shape_cast %45 : vector<16xf32> to vector<16x1xf32>
    %cst_12 = arith.constant 3.200000e+01 : f32
    %47 = vector.broadcast %cst_12 : f32 to vector<16x1xf32>
    %48 = arith.divf %46, %47 : vector<16x1xf32>
    %49 = vector.broadcast %48 : vector<16x1xf32> to vector<16x32xf32>
    %50 = arith.subf %44, %49 : vector<16x32xf32>
    %51 = arith.mulf %50, %50 : vector<16x32xf32>
    %cst_13 = arith.constant dense<0.000000e+00> : vector<16xf32>
    %52 = vector.multi_reduction <add>, %51, %cst_13 [1] : vector<16x32xf32> to vector<16xf32>
    %53 = vector.shape_cast %52 : vector<16xf32> to vector<16x1xf32>
    %cst_14 = arith.constant 3.200000e+01 : f32
    %54 = vector.broadcast %cst_14 : f32 to vector<16x1xf32>
    %55 = arith.divf %53, %54 : vector<16x1xf32>
    %56 = vector.broadcast %48 : vector<16x1xf32> to vector<16x32xf32>
    %57 = arith.subf %44, %56 : vector<16x32xf32>
    %cst_15 = arith.constant 9.99999974E-6 : f32
    %58 = vector.broadcast %cst_15 : f32 to vector<16x1xf32>
    %59 = arith.addf %55, %58 : vector<16x1xf32>
    %60 = math.rsqrt %59 : vector<16x1xf32>
    %61 = vector.broadcast %60 : vector<16x1xf32> to vector<16x32xf32>
    %62 = arith.mulf %57, %61 : vector<16x32xf32>
    %63 = vector.broadcast %10 : vector<1x32xf32> to vector<16x32xf32>
    %64 = arith.mulf %62, %63 : vector<16x32xf32>
    %65 = vector.broadcast %11 : vector<1x32xf32> to vector<16x32xf32>
    %66 = arith.addf %64, %65 : vector<16x32xf32>
    %cst_16 = arith.constant dense<0.000000e+00> : vector<16x96xf32>
    %67 = tpu.matmul %66, %4, %cst_16 {dimension_numbers = #tpu.dot_dimension_numbers<[1], [0], [0], [1], [0, 0, 1, 1], [], []>} : vector<16x32xf32>, vector<32x96xf32>, vector<16x96xf32> -> vector<16x96xf32>
    %68 = vector.broadcast %15 : vector<1x96xf32> to vector<16x96xf32>
    %69 = arith.addf %67, %68 : vector<16x96xf32>
    %70 = vector.shape_cast %69 : vector<16x96xf32> to vector<2x8x96xf32>
    %71 = vector.extract_strided_slice %70 {offsets = [0, 0, 0], sizes = [2, 1, 96], strides = [1, 1, 1]} : vector<2x8x96xf32> to vector<2x1x96xf32>
    %72 = vector.shape_cast %71 : vector<2x1x96xf32> to vector<2x96xf32>
    %73 = vector.extract_strided_slice %70 {offsets = [0, 1, 0], sizes = [2, 1, 96], strides = [1, 1, 1]} : vector<2x8x96xf32> to vector<2x1x96xf32>
    %74 = vector.shape_cast %73 : vector<2x1x96xf32> to vector<2x96xf32>
    %75 = vector.extract_strided_slice %70 {offsets = [0, 2, 0], sizes = [2, 1, 96], strides = [1, 1, 1]} : vector<2x8x96xf32> to vector<2x1x96xf32>
    %76 = vector.shape_cast %75 : vector<2x1x96xf32> to vector<2x96xf32>
    %77 = vector.extract_strided_slice %70 {offsets = [0, 3, 0], sizes = [2, 1, 96], strides = [1, 1, 1]} : vector<2x8x96xf32> to vector<2x1x96xf32>
    %78 = vector.shape_cast %77 : vector<2x1x96xf32> to vector<2x96xf32>
    %79 = vector.extract_strided_slice %70 {offsets = [0, 4, 0], sizes = [2, 1, 96], strides = [1, 1, 1]} : vector<2x8x96xf32> to vector<2x1x96xf32>
    %80 = vector.shape_cast %79 : vector<2x1x96xf32> to vector<2x96xf32>
    %81 = vector.extract_strided_slice %70 {offsets = [0, 5, 0], sizes = [2, 1, 96], strides = [1, 1, 1]} : vector<2x8x96xf32> to vector<2x1x96xf32>
    %82 = vector.shape_cast %81 : vector<2x1x96xf32> to vector<2x96xf32>
    %83 = vector.extract_strided_slice %70 {offsets = [0, 6, 0], sizes = [2, 1, 96], strides = [1, 1, 1]} : vector<2x8x96xf32> to vector<2x1x96xf32>
    %84 = vector.shape_cast %83 : vector<2x1x96xf32> to vector<2x96xf32>
    %85 = vector.extract_strided_slice %70 {offsets = [0, 7, 0], sizes = [2, 1, 96], strides = [1, 1, 1]} : vector<2x8x96xf32> to vector<2x1x96xf32>
    %86 = vector.shape_cast %85 : vector<2x1x96xf32> to vector<2x96xf32>
    %cst_17 = arith.constant 0.000000e+00 : f32
    %87 = vector.broadcast %cst_17 : f32 to vector<2x32xf32>
    %cst_18 = arith.constant dense<0.000000e+00> : vector<2x96xf32>
    %88 = tpu.matmul %87, %5, %cst_18 {dimension_numbers = #tpu.dot_dimension_numbers<[1], [0], [0], [1], [0, 0, 1, 1], [], []>} : vector<2x32xf32>, vector<32x96xf32>, vector<2x96xf32> -> vector<2x96xf32>
    %89 = vector.broadcast %16 : vector<1x96xf32> to vector<2x96xf32>
    %90 = arith.addf %88, %89 : vector<2x96xf32>
    %91 = vector.extract_strided_slice %72 {offsets = [0, 0], sizes = [2, 64], strides = [1, 1]} : vector<2x96xf32> to vector<2x64xf32>
    %92 = vector.extract_strided_slice %90 {offsets = [0, 0], sizes = [2, 64], strides = [1, 1]} : vector<2x96xf32> to vector<2x64xf32>
    %93 = arith.addf %91, %92 : vector<2x64xf32>
    %cst_19 = arith.constant 5.000000e-01 : f32
    %94 = vector.broadcast %cst_19 : f32 to vector<2x64xf32>
    %95 = arith.mulf %94, %93 : vector<2x64xf32>
    %96 = math.tanh %95 : vector<2x64xf32>
    %cst_20 = arith.constant 1.000000e+00 : f32
    %97 = vector.broadcast %cst_20 : f32 to vector<2x64xf32>
    %98 = arith.addf %97, %96 : vector<2x64xf32>
    %cst_21 = arith.constant 5.000000e-01 : f32
    %99 = vector.broadcast %cst_21 : f32 to vector<2x64xf32>
    %100 = arith.mulf %99, %98 : vector<2x64xf32>
    %101 = vector.extract_strided_slice %100 {offsets = [0, 0], sizes = [2, 32], strides = [1, 1]} : vector<2x64xf32> to vector<2x32xf32>
    %102 = vector.extract_strided_slice %100 {offsets = [0, 32], sizes = [2, 32], strides = [1, 1]} : vector<2x64xf32> to vector<2x32xf32>
    %103 = vector.extract_strided_slice %72 {offsets = [0, 64], sizes = [2, 32], strides = [1, 1]} : vector<2x96xf32> to vector<2x32xf32>
    %104 = vector.extract_strided_slice %90 {offsets = [0, 64], sizes = [2, 32], strides = [1, 1]} : vector<2x96xf32> to vector<2x32xf32>
    %105 = arith.mulf %101, %104 : vector<2x32xf32>
    %106 = arith.addf %103, %105 : vector<2x32xf32>
    %107 = math.tanh %106 : vector<2x32xf32>
    %cst_22 = arith.constant 1.000000e+00 : f32
    %108 = vector.broadcast %cst_22 : f32 to vector<2x32xf32>
    %109 = arith.subf %108, %102 : vector<2x32xf32>
    %110 = arith.mulf %109, %107 : vector<2x32xf32>
    %111 = arith.mulf %102, %87 : vector<2x32xf32>
    %112 = arith.addf %110, %111 : vector<2x32xf32>
    %cst_23 = arith.constant dense<0.000000e+00> : vector<2x96xf32>
    %113 = tpu.matmul %112, %5, %cst_23 {dimension_numbers = #tpu.dot_dimension_numbers<[1], [0], [0], [1], [0, 0, 1, 1], [], []>} : vector<2x32xf32>, vector<32x96xf32>, vector<2x96xf32> -> vector<2x96xf32>
    %114 = vector.broadcast %16 : vector<1x96xf32> to vector<2x96xf32>
    %115 = arith.addf %113, %114 : vector<2x96xf32>
    %116 = vector.extract_strided_slice %74 {offsets = [0, 0], sizes = [2, 64], strides = [1, 1]} : vector<2x96xf32> to vector<2x64xf32>
    %117 = vector.extract_strided_slice %115 {offsets = [0, 0], sizes = [2, 64], strides = [1, 1]} : vector<2x96xf32> to vector<2x64xf32>
    %118 = arith.addf %116, %117 : vector<2x64xf32>
    %cst_24 = arith.constant 5.000000e-01 : f32
    %119 = vector.broadcast %cst_24 : f32 to vector<2x64xf32>
    %120 = arith.mulf %119, %118 : vector<2x64xf32>
    %121 = math.tanh %120 : vector<2x64xf32>
    %cst_25 = arith.constant 1.000000e+00 : f32
    %122 = vector.broadcast %cst_25 : f32 to vector<2x64xf32>
    %123 = arith.addf %122, %121 : vector<2x64xf32>
    %cst_26 = arith.constant 5.000000e-01 : f32
    %124 = vector.broadcast %cst_26 : f32 to vector<2x64xf32>
    %125 = arith.mulf %124, %123 : vector<2x64xf32>
    %126 = vector.extract_strided_slice %125 {offsets = [0, 0], sizes = [2, 32], strides = [1, 1]} : vector<2x64xf32> to vector<2x32xf32>
    %127 = vector.extract_strided_slice %125 {offsets = [0, 32], sizes = [2, 32], strides = [1, 1]} : vector<2x64xf32> to vector<2x32xf32>
    %128 = vector.extract_strided_slice %74 {offsets = [0, 64], sizes = [2, 32], strides = [1, 1]} : vector<2x96xf32> to vector<2x32xf32>
    %129 = vector.extract_strided_slice %115 {offsets = [0, 64], sizes = [2, 32], strides = [1, 1]} : vector<2x96xf32> to vector<2x32xf32>
    %130 = arith.mulf %126, %129 : vector<2x32xf32>
    %131 = arith.addf %128, %130 : vector<2x32xf32>
    %132 = math.tanh %131 : vector<2x32xf32>
    %cst_27 = arith.constant 1.000000e+00 : f32
    %133 = vector.broadcast %cst_27 : f32 to vector<2x32xf32>
    %134 = arith.subf %133, %127 : vector<2x32xf32>
    %135 = arith.mulf %134, %132 : vector<2x32xf32>
    %136 = arith.mulf %127, %112 : vector<2x32xf32>
    %137 = arith.addf %135, %136 : vector<2x32xf32>
    %cst_28 = arith.constant dense<0.000000e+00> : vector<2x96xf32>
    %138 = tpu.matmul %137, %5, %cst_28 {dimension_numbers = #tpu.dot_dimension_numbers<[1], [0], [0], [1], [0, 0, 1, 1], [], []>} : vector<2x32xf32>, vector<32x96xf32>, vector<2x96xf32> -> vector<2x96xf32>
    %139 = vector.broadcast %16 : vector<1x96xf32> to vector<2x96xf32>
    %140 = arith.addf %138, %139 : vector<2x96xf32>
    %141 = vector.extract_strided_slice %76 {offsets = [0, 0], sizes = [2, 64], strides = [1, 1]} : vector<2x96xf32> to vector<2x64xf32>
    %142 = vector.extract_strided_slice %140 {offsets = [0, 0], sizes = [2, 64], strides = [1, 1]} : vector<2x96xf32> to vector<2x64xf32>
    %143 = arith.addf %141, %142 : vector<2x64xf32>
    %cst_29 = arith.constant 5.000000e-01 : f32
    %144 = vector.broadcast %cst_29 : f32 to vector<2x64xf32>
    %145 = arith.mulf %144, %143 : vector<2x64xf32>
    %146 = math.tanh %145 : vector<2x64xf32>
    %cst_30 = arith.constant 1.000000e+00 : f32
    %147 = vector.broadcast %cst_30 : f32 to vector<2x64xf32>
    %148 = arith.addf %147, %146 : vector<2x64xf32>
    %cst_31 = arith.constant 5.000000e-01 : f32
    %149 = vector.broadcast %cst_31 : f32 to vector<2x64xf32>
    %150 = arith.mulf %149, %148 : vector<2x64xf32>
    %151 = vector.extract_strided_slice %150 {offsets = [0, 0], sizes = [2, 32], strides = [1, 1]} : vector<2x64xf32> to vector<2x32xf32>
    %152 = vector.extract_strided_slice %150 {offsets = [0, 32], sizes = [2, 32], strides = [1, 1]} : vector<2x64xf32> to vector<2x32xf32>
    %153 = vector.extract_strided_slice %76 {offsets = [0, 64], sizes = [2, 32], strides = [1, 1]} : vector<2x96xf32> to vector<2x32xf32>
    %154 = vector.extract_strided_slice %140 {offsets = [0, 64], sizes = [2, 32], strides = [1, 1]} : vector<2x96xf32> to vector<2x32xf32>
    %155 = arith.mulf %151, %154 : vector<2x32xf32>
    %156 = arith.addf %153, %155 : vector<2x32xf32>
    %157 = math.tanh %156 : vector<2x32xf32>
    %cst_32 = arith.constant 1.000000e+00 : f32
    %158 = vector.broadcast %cst_32 : f32 to vector<2x32xf32>
    %159 = arith.subf %158, %152 : vector<2x32xf32>
    %160 = arith.mulf %159, %157 : vector<2x32xf32>
    %161 = arith.mulf %152, %137 : vector<2x32xf32>
    %162 = arith.addf %160, %161 : vector<2x32xf32>
    %cst_33 = arith.constant dense<0.000000e+00> : vector<2x96xf32>
    %163 = tpu.matmul %162, %5, %cst_33 {dimension_numbers = #tpu.dot_dimension_numbers<[1], [0], [0], [1], [0, 0, 1, 1], [], []>} : vector<2x32xf32>, vector<32x96xf32>, vector<2x96xf32> -> vector<2x96xf32>
    %164 = vector.broadcast %16 : vector<1x96xf32> to vector<2x96xf32>
    %165 = arith.addf %163, %164 : vector<2x96xf32>
    %166 = vector.extract_strided_slice %78 {offsets = [0, 0], sizes = [2, 64], strides = [1, 1]} : vector<2x96xf32> to vector<2x64xf32>
    %167 = vector.extract_strided_slice %165 {offsets = [0, 0], sizes = [2, 64], strides = [1, 1]} : vector<2x96xf32> to vector<2x64xf32>
    %168 = arith.addf %166, %167 : vector<2x64xf32>
    %cst_34 = arith.constant 5.000000e-01 : f32
    %169 = vector.broadcast %cst_34 : f32 to vector<2x64xf32>
    %170 = arith.mulf %169, %168 : vector<2x64xf32>
    %171 = math.tanh %170 : vector<2x64xf32>
    %cst_35 = arith.constant 1.000000e+00 : f32
    %172 = vector.broadcast %cst_35 : f32 to vector<2x64xf32>
    %173 = arith.addf %172, %171 : vector<2x64xf32>
    %cst_36 = arith.constant 5.000000e-01 : f32
    %174 = vector.broadcast %cst_36 : f32 to vector<2x64xf32>
    %175 = arith.mulf %174, %173 : vector<2x64xf32>
    %176 = vector.extract_strided_slice %175 {offsets = [0, 0], sizes = [2, 32], strides = [1, 1]} : vector<2x64xf32> to vector<2x32xf32>
    %177 = vector.extract_strided_slice %175 {offsets = [0, 32], sizes = [2, 32], strides = [1, 1]} : vector<2x64xf32> to vector<2x32xf32>
    %178 = vector.extract_strided_slice %78 {offsets = [0, 64], sizes = [2, 32], strides = [1, 1]} : vector<2x96xf32> to vector<2x32xf32>
    %179 = vector.extract_strided_slice %165 {offsets = [0, 64], sizes = [2, 32], strides = [1, 1]} : vector<2x96xf32> to vector<2x32xf32>
    %180 = arith.mulf %176, %179 : vector<2x32xf32>
    %181 = arith.addf %178, %180 : vector<2x32xf32>
    %182 = math.tanh %181 : vector<2x32xf32>
    %cst_37 = arith.constant 1.000000e+00 : f32
    %183 = vector.broadcast %cst_37 : f32 to vector<2x32xf32>
    %184 = arith.subf %183, %177 : vector<2x32xf32>
    %185 = arith.mulf %184, %182 : vector<2x32xf32>
    %186 = arith.mulf %177, %162 : vector<2x32xf32>
    %187 = arith.addf %185, %186 : vector<2x32xf32>
    %cst_38 = arith.constant dense<0.000000e+00> : vector<2x96xf32>
    %188 = tpu.matmul %187, %5, %cst_38 {dimension_numbers = #tpu.dot_dimension_numbers<[1], [0], [0], [1], [0, 0, 1, 1], [], []>} : vector<2x32xf32>, vector<32x96xf32>, vector<2x96xf32> -> vector<2x96xf32>
    %189 = vector.broadcast %16 : vector<1x96xf32> to vector<2x96xf32>
    %190 = arith.addf %188, %189 : vector<2x96xf32>
    %191 = vector.extract_strided_slice %80 {offsets = [0, 0], sizes = [2, 64], strides = [1, 1]} : vector<2x96xf32> to vector<2x64xf32>
    %192 = vector.extract_strided_slice %190 {offsets = [0, 0], sizes = [2, 64], strides = [1, 1]} : vector<2x96xf32> to vector<2x64xf32>
    %193 = arith.addf %191, %192 : vector<2x64xf32>
    %cst_39 = arith.constant 5.000000e-01 : f32
    %194 = vector.broadcast %cst_39 : f32 to vector<2x64xf32>
    %195 = arith.mulf %194, %193 : vector<2x64xf32>
    %196 = math.tanh %195 : vector<2x64xf32>
    %cst_40 = arith.constant 1.000000e+00 : f32
    %197 = vector.broadcast %cst_40 : f32 to vector<2x64xf32>
    %198 = arith.addf %197, %196 : vector<2x64xf32>
    %cst_41 = arith.constant 5.000000e-01 : f32
    %199 = vector.broadcast %cst_41 : f32 to vector<2x64xf32>
    %200 = arith.mulf %199, %198 : vector<2x64xf32>
    %201 = vector.extract_strided_slice %200 {offsets = [0, 0], sizes = [2, 32], strides = [1, 1]} : vector<2x64xf32> to vector<2x32xf32>
    %202 = vector.extract_strided_slice %200 {offsets = [0, 32], sizes = [2, 32], strides = [1, 1]} : vector<2x64xf32> to vector<2x32xf32>
    %203 = vector.extract_strided_slice %80 {offsets = [0, 64], sizes = [2, 32], strides = [1, 1]} : vector<2x96xf32> to vector<2x32xf32>
    %204 = vector.extract_strided_slice %190 {offsets = [0, 64], sizes = [2, 32], strides = [1, 1]} : vector<2x96xf32> to vector<2x32xf32>
    %205 = arith.mulf %201, %204 : vector<2x32xf32>
    %206 = arith.addf %203, %205 : vector<2x32xf32>
    %207 = math.tanh %206 : vector<2x32xf32>
    %cst_42 = arith.constant 1.000000e+00 : f32
    %208 = vector.broadcast %cst_42 : f32 to vector<2x32xf32>
    %209 = arith.subf %208, %202 : vector<2x32xf32>
    %210 = arith.mulf %209, %207 : vector<2x32xf32>
    %211 = arith.mulf %202, %187 : vector<2x32xf32>
    %212 = arith.addf %210, %211 : vector<2x32xf32>
    %cst_43 = arith.constant dense<0.000000e+00> : vector<2x96xf32>
    %213 = tpu.matmul %212, %5, %cst_43 {dimension_numbers = #tpu.dot_dimension_numbers<[1], [0], [0], [1], [0, 0, 1, 1], [], []>} : vector<2x32xf32>, vector<32x96xf32>, vector<2x96xf32> -> vector<2x96xf32>
    %214 = vector.broadcast %16 : vector<1x96xf32> to vector<2x96xf32>
    %215 = arith.addf %213, %214 : vector<2x96xf32>
    %216 = vector.extract_strided_slice %82 {offsets = [0, 0], sizes = [2, 64], strides = [1, 1]} : vector<2x96xf32> to vector<2x64xf32>
    %217 = vector.extract_strided_slice %215 {offsets = [0, 0], sizes = [2, 64], strides = [1, 1]} : vector<2x96xf32> to vector<2x64xf32>
    %218 = arith.addf %216, %217 : vector<2x64xf32>
    %cst_44 = arith.constant 5.000000e-01 : f32
    %219 = vector.broadcast %cst_44 : f32 to vector<2x64xf32>
    %220 = arith.mulf %219, %218 : vector<2x64xf32>
    %221 = math.tanh %220 : vector<2x64xf32>
    %cst_45 = arith.constant 1.000000e+00 : f32
    %222 = vector.broadcast %cst_45 : f32 to vector<2x64xf32>
    %223 = arith.addf %222, %221 : vector<2x64xf32>
    %cst_46 = arith.constant 5.000000e-01 : f32
    %224 = vector.broadcast %cst_46 : f32 to vector<2x64xf32>
    %225 = arith.mulf %224, %223 : vector<2x64xf32>
    %226 = vector.extract_strided_slice %225 {offsets = [0, 0], sizes = [2, 32], strides = [1, 1]} : vector<2x64xf32> to vector<2x32xf32>
    %227 = vector.extract_strided_slice %225 {offsets = [0, 32], sizes = [2, 32], strides = [1, 1]} : vector<2x64xf32> to vector<2x32xf32>
    %228 = vector.extract_strided_slice %82 {offsets = [0, 64], sizes = [2, 32], strides = [1, 1]} : vector<2x96xf32> to vector<2x32xf32>
    %229 = vector.extract_strided_slice %215 {offsets = [0, 64], sizes = [2, 32], strides = [1, 1]} : vector<2x96xf32> to vector<2x32xf32>
    %230 = arith.mulf %226, %229 : vector<2x32xf32>
    %231 = arith.addf %228, %230 : vector<2x32xf32>
    %232 = math.tanh %231 : vector<2x32xf32>
    %cst_47 = arith.constant 1.000000e+00 : f32
    %233 = vector.broadcast %cst_47 : f32 to vector<2x32xf32>
    %234 = arith.subf %233, %227 : vector<2x32xf32>
    %235 = arith.mulf %234, %232 : vector<2x32xf32>
    %236 = arith.mulf %227, %212 : vector<2x32xf32>
    %237 = arith.addf %235, %236 : vector<2x32xf32>
    %cst_48 = arith.constant dense<0.000000e+00> : vector<2x96xf32>
    %238 = tpu.matmul %237, %5, %cst_48 {dimension_numbers = #tpu.dot_dimension_numbers<[1], [0], [0], [1], [0, 0, 1, 1], [], []>} : vector<2x32xf32>, vector<32x96xf32>, vector<2x96xf32> -> vector<2x96xf32>
    %239 = vector.broadcast %16 : vector<1x96xf32> to vector<2x96xf32>
    %240 = arith.addf %238, %239 : vector<2x96xf32>
    %241 = vector.extract_strided_slice %84 {offsets = [0, 0], sizes = [2, 64], strides = [1, 1]} : vector<2x96xf32> to vector<2x64xf32>
    %242 = vector.extract_strided_slice %240 {offsets = [0, 0], sizes = [2, 64], strides = [1, 1]} : vector<2x96xf32> to vector<2x64xf32>
    %243 = arith.addf %241, %242 : vector<2x64xf32>
    %cst_49 = arith.constant 5.000000e-01 : f32
    %244 = vector.broadcast %cst_49 : f32 to vector<2x64xf32>
    %245 = arith.mulf %244, %243 : vector<2x64xf32>
    %246 = math.tanh %245 : vector<2x64xf32>
    %cst_50 = arith.constant 1.000000e+00 : f32
    %247 = vector.broadcast %cst_50 : f32 to vector<2x64xf32>
    %248 = arith.addf %247, %246 : vector<2x64xf32>
    %cst_51 = arith.constant 5.000000e-01 : f32
    %249 = vector.broadcast %cst_51 : f32 to vector<2x64xf32>
    %250 = arith.mulf %249, %248 : vector<2x64xf32>
    %251 = vector.extract_strided_slice %250 {offsets = [0, 0], sizes = [2, 32], strides = [1, 1]} : vector<2x64xf32> to vector<2x32xf32>
    %252 = vector.extract_strided_slice %250 {offsets = [0, 32], sizes = [2, 32], strides = [1, 1]} : vector<2x64xf32> to vector<2x32xf32>
    %253 = vector.extract_strided_slice %84 {offsets = [0, 64], sizes = [2, 32], strides = [1, 1]} : vector<2x96xf32> to vector<2x32xf32>
    %254 = vector.extract_strided_slice %240 {offsets = [0, 64], sizes = [2, 32], strides = [1, 1]} : vector<2x96xf32> to vector<2x32xf32>
    %255 = arith.mulf %251, %254 : vector<2x32xf32>
    %256 = arith.addf %253, %255 : vector<2x32xf32>
    %257 = math.tanh %256 : vector<2x32xf32>
    %cst_52 = arith.constant 1.000000e+00 : f32
    %258 = vector.broadcast %cst_52 : f32 to vector<2x32xf32>
    %259 = arith.subf %258, %252 : vector<2x32xf32>
    %260 = arith.mulf %259, %257 : vector<2x32xf32>
    %261 = arith.mulf %252, %237 : vector<2x32xf32>
    %262 = arith.addf %260, %261 : vector<2x32xf32>
    %cst_53 = arith.constant dense<0.000000e+00> : vector<2x96xf32>
    %263 = tpu.matmul %262, %5, %cst_53 {dimension_numbers = #tpu.dot_dimension_numbers<[1], [0], [0], [1], [0, 0, 1, 1], [], []>} : vector<2x32xf32>, vector<32x96xf32>, vector<2x96xf32> -> vector<2x96xf32>
    %264 = vector.broadcast %16 : vector<1x96xf32> to vector<2x96xf32>
    %265 = arith.addf %263, %264 : vector<2x96xf32>
    %266 = vector.extract_strided_slice %86 {offsets = [0, 0], sizes = [2, 64], strides = [1, 1]} : vector<2x96xf32> to vector<2x64xf32>
    %267 = vector.extract_strided_slice %265 {offsets = [0, 0], sizes = [2, 64], strides = [1, 1]} : vector<2x96xf32> to vector<2x64xf32>
    %268 = arith.addf %266, %267 : vector<2x64xf32>
    %cst_54 = arith.constant 5.000000e-01 : f32
    %269 = vector.broadcast %cst_54 : f32 to vector<2x64xf32>
    %270 = arith.mulf %269, %268 : vector<2x64xf32>
    %271 = math.tanh %270 : vector<2x64xf32>
    %cst_55 = arith.constant 1.000000e+00 : f32
    %272 = vector.broadcast %cst_55 : f32 to vector<2x64xf32>
    %273 = arith.addf %272, %271 : vector<2x64xf32>
    %cst_56 = arith.constant 5.000000e-01 : f32
    %274 = vector.broadcast %cst_56 : f32 to vector<2x64xf32>
    %275 = arith.mulf %274, %273 : vector<2x64xf32>
    %276 = vector.extract_strided_slice %275 {offsets = [0, 0], sizes = [2, 32], strides = [1, 1]} : vector<2x64xf32> to vector<2x32xf32>
    %277 = vector.extract_strided_slice %275 {offsets = [0, 32], sizes = [2, 32], strides = [1, 1]} : vector<2x64xf32> to vector<2x32xf32>
    %278 = vector.extract_strided_slice %86 {offsets = [0, 64], sizes = [2, 32], strides = [1, 1]} : vector<2x96xf32> to vector<2x32xf32>
    %279 = vector.extract_strided_slice %265 {offsets = [0, 64], sizes = [2, 32], strides = [1, 1]} : vector<2x96xf32> to vector<2x32xf32>
    %280 = arith.mulf %276, %279 : vector<2x32xf32>
    %281 = arith.addf %278, %280 : vector<2x32xf32>
    %282 = math.tanh %281 : vector<2x32xf32>
    %cst_57 = arith.constant 1.000000e+00 : f32
    %283 = vector.broadcast %cst_57 : f32 to vector<2x32xf32>
    %284 = arith.subf %283, %277 : vector<2x32xf32>
    %285 = arith.mulf %284, %282 : vector<2x32xf32>
    %286 = arith.mulf %277, %262 : vector<2x32xf32>
    %287 = arith.addf %285, %286 : vector<2x32xf32>
    %cst_58 = arith.constant dense<0.000000e+00> : vector<2x32xf32>
    %288 = tpu.matmul %287, %3, %cst_58 {dimension_numbers = #tpu.dot_dimension_numbers<[1], [0], [0], [1], [0, 0, 1, 1], [], []>} : vector<2x32xf32>, vector<32x32xf32>, vector<2x32xf32> -> vector<2x32xf32>
    %289 = vector.broadcast %12 : vector<1x32xf32> to vector<2x32xf32>
    %290 = arith.addf %288, %289 : vector<2x32xf32>
    %cst_59 = arith.constant dense<0.000000e+00> : vector<2xf32>
    %291 = vector.multi_reduction <add>, %290, %cst_59 [1] : vector<2x32xf32> to vector<2xf32>
    %292 = vector.shape_cast %291 : vector<2xf32> to vector<2x1xf32>
    %cst_60 = arith.constant 3.200000e+01 : f32
    %293 = vector.broadcast %cst_60 : f32 to vector<2x1xf32>
    %294 = arith.divf %292, %293 : vector<2x1xf32>
    %295 = vector.broadcast %294 : vector<2x1xf32> to vector<2x32xf32>
    %296 = arith.subf %290, %295 : vector<2x32xf32>
    %297 = arith.mulf %296, %296 : vector<2x32xf32>
    %cst_61 = arith.constant dense<0.000000e+00> : vector<2xf32>
    %298 = vector.multi_reduction <add>, %297, %cst_61 [1] : vector<2x32xf32> to vector<2xf32>
    %299 = vector.shape_cast %298 : vector<2xf32> to vector<2x1xf32>
    %cst_62 = arith.constant 3.200000e+01 : f32
    %300 = vector.broadcast %cst_62 : f32 to vector<2x1xf32>
    %301 = arith.divf %299, %300 : vector<2x1xf32>
    %302 = vector.broadcast %294 : vector<2x1xf32> to vector<2x32xf32>
    %303 = arith.subf %290, %302 : vector<2x32xf32>
    %cst_63 = arith.constant 9.99999974E-6 : f32
    %304 = vector.broadcast %cst_63 : f32 to vector<2x1xf32>
    %305 = arith.addf %301, %304 : vector<2x1xf32>
    %306 = math.rsqrt %305 : vector<2x1xf32>
    %307 = vector.broadcast %306 : vector<2x1xf32> to vector<2x32xf32>
    %308 = arith.mulf %303, %307 : vector<2x32xf32>
    %309 = vector.broadcast %13 : vector<1x32xf32> to vector<2x32xf32>
    %310 = arith.mulf %308, %309 : vector<2x32xf32>
    %311 = vector.broadcast %14 : vector<1x32xf32> to vector<2x32xf32>
    %312 = arith.addf %310, %311 : vector<2x32xf32>
    %cst_64 = arith.constant 5.000000e-01 : f32
    %313 = vector.broadcast %cst_64 : f32 to vector<2x32xf32>
    %314 = arith.mulf %313, %312 : vector<2x32xf32>
    %cst_65 = arith.constant 0.707106769 : f32
    %315 = vector.broadcast %cst_65 : f32 to vector<2x32xf32>
    %316 = arith.mulf %312, %315 : vector<2x32xf32>
    %317 = math.erf %316 : vector<2x32xf32>
    %cst_66 = arith.constant 1.000000e+00 : f32
    %318 = vector.broadcast %cst_66 : f32 to vector<2x32xf32>
    %319 = arith.addf %318, %317 : vector<2x32xf32>
    %320 = arith.mulf %314, %319 : vector<2x32xf32>
    %cst_67 = arith.constant dense<0.000000e+00> : vector<2x128xf32>
    %321 = tpu.matmul %320, %6, %cst_67 {dimension_numbers = #tpu.dot_dimension_numbers<[1], [0], [0], [1], [0, 0, 1, 1], [], []>} : vector<2x32xf32>, vector<32x128xf32>, vector<2x128xf32> -> vector<2x128xf32>
    %322 = vector.broadcast %17 : vector<1x128xf32> to vector<2x128xf32>
    %323 = arith.addf %321, %322 : vector<2x128xf32>
    %c0_68 = arith.constant 0 : index
    %c0_69 = arith.constant 0 : index
    %324 = vector.load %arg3[%c0_68, %c0_69] : memref<2x128xf32, #tpu.memory_space<vmem>>, vector<2x128xf32>
    tpu.vector_store %arg3[%c0_68, %c0_69], %323 {strides = array<i32>} : memref<2x128xf32, #tpu.memory_space<vmem>>, vector<2x128xf32>,
    return
  }
}

</mosaic_0001>

<bundles_post_ra>
// kernel: rnn_model_forward.1
= control target key start
LH: loop header
LB: loop body
LE: loop exit
PB: predicated region body
PF: predicated region fallthrough
CT: control target
= control target key end

     0   :  { %8 = vsyncpa [#allocation3], 0  ;;  %s2383_s0 = inlined_call_operand.hbm [shape: f32[2,8,32], index: 0, kind: input, shape index: {}]   ;;  %s2384_s1 = inlined_call_operand.hbm [shape: f32[32,384], index: 1, kind: input, shape index: {}]   ;;  %s2385_s2 = inlined_call_operand.hbm [shape: f32[11,128], index: 2, kind: input, shape index: {}]   ;;  %s2386_s3 = inlined_call_operand.hbm [shape: f32[2,128], index: 3, kind: output, shape index: {}]  }
   0x1   :  { %9 = vsyncpa [#allocation6], 0 }
   0x2   :  { %10 = vsyncpa [#allocation4], 0  ;;  %s2033_s12 = smov [#allocation5]  }
   0x3   :  { %s28_s13 = sshll.u32 %s2033_s12, 4  ;;  %s29_s13 = int_to_ptr.vmem [resolvable:$true] %s28_s13 }
   0x4   :  { %s1955_s14 = scalar_lea.vmem %s29_s13, 1536  ;;  %p1960_p1 = scmp.lt.s32.totalorder %s29_s13, %s29_s13 }
   0x5   :  { %p1956_p0 = scmp.ne.s32.totalorder %s29_s13, %s1955_s14  ;;  %p1961_p2 = scmp.lt.s32.totalorder %s1955_s14, %s1955_s14 }
   0x7   :  { %p1962_p3 = por %p1961_p2, %p1960_p1 }
   0x9   :  { %p1963_p4 = pnand %p1962_p3, %p1956_p0 }
   0xb   :  { %1966 = shalt.err (!%p1963_p4)
}
   0xc   :  { %s2034_s15 = smov 384   ;;  %s2035_s16 = smov 24  }
   0xd   :  { %34 = dma.hbm_to_vmem [thread:$0]  %s2384_s1, 1536, %s29_s13, [#allocation6], %s2034_s15, %s2034_s15, %s2035_s16  }
   0xe   :  { %s2036_s19 = smov [#allocation2]  }
   0xf   :  { %s16_s20 = sshll.u32 %s2036_s19, 4  ;;  %s17_s20 = int_to_ptr.vmem [resolvable:$true] %s16_s20 }
  0x10   :  { %s1975_s21 = scalar_lea.vmem %s17_s20, 256  ;;  %p1980_p6 = scmp.lt.s32.totalorder %s17_s20, %s17_s20 }
  0x11   :  { %p1976_p5 = scmp.ne.s32.totalorder %s17_s20, %s1975_s21  ;;  %p1981_p7 = scmp.lt.s32.totalorder %s1975_s21, %s1975_s21 }
  0x13   :  { %p1982_p8 = por %p1981_p7, %p1980_p6 }
  0x15   :  { %p1983_p9 = pnand %p1982_p8, %p1976_p5 }
  0x17   :  { %1986 = shalt.err (!%p1983_p9)
}
  0x18   :  { %s2037_s22 = smov 128   ;;  %s2038_s23 = smov 8  }
  0x19   :  { %22 = dma.hbm_to_vmem [thread:$0]  %s2383_s0, 256, %s17_s20, [#allocation3], %s2037_s22, %s2037_s22, %s2038_s23  }
  0x1a   :  { %s2039_s26 = smov [#allocation7]  }
  0x1b   :  { %s40_s27 = sshll.u32 %s2039_s26, 4  ;;  %s41_s27 = int_to_ptr.vmem [resolvable:$true] %s40_s27 }
  0x1c   :  { %s1995_s1 = scalar_lea.vmem %s41_s27, 256  ;;  %p2000_p11 = scmp.lt.s32.totalorder %s41_s27, %s41_s27 }
  0x1d   :  { %p1996_p10 = scmp.ne.s32.totalorder %s41_s27, %s1995_s1  ;;  %p2001_p12 = scmp.lt.s32.totalorder %s1995_s1, %s1995_s1 }
  0x1f   :  { %p2002_p13 = por %p2001_p12, %p2000_p11 }
  0x21   :  { %p2003_p0 = pnand %p2002_p13, %p1996_p10 }
  0x23   :  { %2006 = shalt.err (!%p2003_p0)
}
  0x24   :  { %46 = dma.hbm_to_vmem [thread:$0]  %s2385_s2, 256, %s41_s27, [#allocation6], %s2037_s22, %s2037_s22, %s2038_s23  }
  0x25   :  { %2027 = dma.done.wait [#allocation3], 256  }
  0x26   :  { %2028 = vsyncadd [#allocation3], 4294967040 }
  0x27   :  { %2029 = dma.done.wait [#allocation6], 1792  }
  0x28   :  { %2030 = vsyncadd [#allocation6], 4294965504  ;;  %v2074_v0 = vld [vmem:[#allocation5 + $0x48] sm:$0xff]  ;;  %v2076_v1 = vld [vmem:[#allocation5 + $0x30] sm:$0xff]  ;;  %vm72_vm0 = vcmask 261120   ;;  %v102_v31 = vlaneseq  ;;  %s2040_s0 = smov 96  }
  0x29   :  { %1723 = vmatprep.subr.mxu0 %v2074_v0  ;;  %v59_v2 = vld [vmem:[#allocation5 + $0x18] sm:$0xff]  ;;  %v70_v3 = vld [vmem:[#allocation2] sm:$0xff]  ;;  %v2084_v7 = vld [vmem:[#allocation5] sm:$0xff]  ;;  %s2041_s2 = smov 64   ;;  %v2042_v58 = vmov 0.0   ;;  %vm2043_vm1 = vmmov 0  }
  0x2a   :  { %1724 = vmatpush3.msra.mxu0 %v2074_v0  ;;  %v71_v4 = vld [vmem:[#allocation2 + $0x8] sm:$0xff]  ;;  %v73_v5 = vsel %vm72_vm0, %v70_v3, 0.0  ;;  %v2090_v32 = vshrl.u32 %v102_v31, 7  ;;  %v2093_v34 = vld [vmem:[#allocation7] sm:$0xff]  ;;  %v2104_v45 = vld [vmem:[#allocation5 + $0x50] sm:$0xff]  ;;  %vm266_vm2 = vcmask 523264  }
  0x2b   :  { %1725 = vmatprep.subr.mxu0 %v2076_v1  ;;  %v74_v6 = vsel %vm72_vm0, %v71_v4, 0.0  ;;  %366 = vrot.lane.b32.xlu1 %v2104_v45, %s2040_s0  ;;  %v63_v46 = vld [vmem:[#allocation5 + $0x38] sm:$0xff]  ;;  %v57_v47 = vld [vmem:[#allocation5 + $0x8] sm:$0xff]  ;;  %v60_v48 = vld [vmem:[#allocation5 + $0x20] sm:$0xff]  ;;  %vm498_vm3 = vcmask 1041409   ;;  %vm1525_vm4 = vcmask 254976  }
  0x2c   :  { %1726 = vmatpush3.msra.mxu0 %v2076_v1  ;;  %v75_v8 = vadd.f32 %v74_v6, %v73_v5  ;;  %v104_v33 = vsub.s32 0, %v2090_v32  ;;  %v110_v35 = vsub.s32 1, %v2090_v32  ;;  %v116_v49 = vsub.s32 2, %v2090_v32  ;;  %s2044_s30 = smov [#allocation8]  }
  0x2d   :  { %1727 = vmatprep.subr.mxu0 %v59_v2  ;;  %s1638_s4 = sshll.u32 %s2044_s30, 4  ;;  %s1639_s4 = int_to_ptr.vmem [resolvable:$true] %s1638_s4 }
  0x2e   :  { %1728 = vmatpush3.msra.mxu0 %v59_v2  ;;  %v76_v9 = vrot.slane %v75_v8, 4  ;;  %v105_v36 = vrot.slane %v2093_v34, %v104_v33  ;;  %v111_v40 = vrot.slane %v2093_v34, %v110_v35  ;;  %v117_v51 = vrot.slane %v2093_v34, %v116_v49  ;;  %s2007_s5 = scalar_lea.vmem %s1639_s4, 32  ;;  %p2012_p2 = scmp.lt.s32.totalorder %s1639_s4, %s1639_s4 }
  0x2f   :  { %1729 = vmatprep.subr.mxu0 %v2084_v7  ;;  %364 = vrot.lane.b32.xlu1 %v63_v46, %s2040_s0  ;;  %p2008_p1 = scmp.ne.s32.totalorder %s1639_s4, %s2007_s5  ;;  %p2013_p3 = scmp.lt.s32.totalorder %s2007_s5, %s2007_s5 }
  0x30   :  { %1730 = vmatpush3.msra.mxu0 %v2084_v7  ;;  %v77_v10 = vadd.f32 %v76_v9, %v75_v8 }
  0x31   :  { %1745 = vmatprep.subr.mxu0 %v2042_v58  ;;  %p2014_p4 = por %p2013_p3, %p2012_p2 }
  0x32   :  { %v78_v11 = vrot.slane %v77_v10, 2 }
  0x33   :  { %360 = vrot.lane.b32.xlu1 %v57_v47, %s2040_s0  ;;  %p2015_p5 = pnand %p2014_p4, %p2008_p1 }
  0x34   :  { %v79_v12 = vadd.f32 %v78_v11, %v77_v10 }
  0x36   :  { %v80_v13 = vrot.slane %v79_v12, 1 }
  0x37   :  { %262 = vrot.lane.b32.xlu1 %v2074_v0, %s2041_s2 }
  0x38   :  { %v81_v14 = vadd.f32 %v80_v13, %v79_v12 }
  0x3a   :  { %v83_v15 = vmul.f32 0.0625, %v81_v14 }
  0x3b   :  { %258 = vrot.lane.b32.xlu1 %v2076_v1, %s2041_s2 }
  0x3c   :  { %v84_v16 = vsub.f32 %v70_v3, %v83_v15  ;;  %v85_v17 = vsub.f32 %v71_v4, %v83_v15 }
  0x3e   :  { %v86_v18 = vmul.f32 %v84_v16, %v84_v16  ;;  %v87_v19 = vmul.f32 %v85_v17, %v85_v17 }
  0x3f   :  { %260 = vrot.lane.b32.xlu1 %v63_v46, %s2041_s2 }
  0x40   :  { %v88_v20 = vsel %vm72_vm0, %v86_v18, 0.0  ;;  %v89_v21 = vsel %vm72_vm0, %v87_v19, 0.0 }
  0x41   :  { %v90_v22 = vadd.f32 %v89_v21, %v88_v20 }
  0x43   :  { %v91_v23 = vrot.slane %v90_v22, 4  ;;  %254 = vrot.lane.b32.xlu1 %v59_v2, %s2041_s2 }
  0x45   :  { %v92_v24 = vadd.f32 %v91_v23, %v90_v22 }
  0x47   :  { %v93_v25 = vrot.slane %v92_v24, 2  ;;  %256 = vrot.lane.b32.xlu1 %v60_v48, %s2041_s2 }
  0x49   :  { %v94_v26 = vadd.f32 %v93_v25, %v92_v24  ;;  %v228_v25 = vsub.s32 3, %v2090_v32 }
  0x4b   :  { %v95_v27 = vrot.slane %v94_v26, 1 }
  0x4d   :  { %v96_v28 = vadd.f32 %v95_v27, %v94_v26  ;;  %v234_v27 = vsub.s32 4, %v2090_v32 }
  0x4f   :  { %v97_v29 = vmul.f32 0.0625, %v96_v28  ;;  %v229_v28 = vrot.slane %v2093_v34, %v228_v25  ;;  %v235_v31 = vrot.slane %v2093_v34, %v234_v27  ;;  %v69_v34 = vld [vmem:[#allocation7 + $0x8] sm:$0x7] }
  0x51   :  { %v98_v30 = vadd.f32 1e-05, %v97_v29 }
  0x53   :  { %1867 = vrsqrt.f32 %v98_v30 }
  0x60   :  { %v1868_v37 = vpop.eup %1867 }
  0x61   :  { %v100_v38 = vmul.f32 %v1868_v37, %v84_v16  ;;  %v101_v39 = vmul.f32 %v1868_v37, %v85_v17 }
  0x63   :  { %v106_v41 = vmul.f32 %v105_v36, %v100_v38  ;;  %v107_v42 = vmul.f32 %v105_v36, %v101_v39 }
  0x65   :  { %v112_v43 = vadd.f32 %v111_v40, %v106_v41  ;;  %v113_v44 = vadd.f32 %v111_v40, %v107_v42  ;;  %v2190_v42 = vrot.slane %v69_v34, %v110_v35 }
  0x67   :  { %1731 = vmatprep.mubr.msk.f32.mxu0 %vm72_vm0, %v112_v43 }
  0x68   :  { %1732 = vmatmul.mubr.msk.f32.vlgmr.msra.gmra.mxu0 %vm72_vm0, %v113_v44 }
  0x69   :  { %1753 = vmatprep.mubr.msk.f32.mxu0 %vm2043_vm1, %v2042_v58 }
  0x9d   :  { %v2124_v57 = vpop.permute.xlu1 %366 }
  0x9e   :  { %1746 = vmatpush3.msra.mxu0 %v2124_v57 }
  0x9f   :  { %1747 = vmatprep.subr.mxu0 %v2042_v58 }
  0xa1   :  { %v2129_v59 = vpop.permute.xlu1 %364 }
  0xa2   :  { %1748 = vmatpush3.msra.mxu0 %v2129_v59 }
  0xa3   :  { %1749 = vmatprep.subr.mxu0 %v2042_v58 }
  0xa5   :  { %v2144_v5 = vpop.permute.xlu1 %360 }
  0xa9   :  { %v263_v9 = vpop.permute.xlu1 %262 }
  0xad   :  { %v259_v10 = vpop.permute.xlu1 %258 }
  0xb1   :  { %v261_v11 = vpop.permute.xlu1 %260 }
  0xb2   :  { %v269_v22 = vsel %vm266_vm2, %v259_v10, %v261_v11 }
  0xb5   :  { %v255_v12 = vpop.permute.xlu1 %254 }
  0xb9   :  { %v257_v13 = vpop.permute.xlu1 %256 }
  0xba   :  { %v268_v24 = vsel %vm266_vm2, %v255_v12, %v257_v13 }
 0x128   :  { %v1733_v50 = vpop.f32.mrf.mxu0 }
 0x129   :  { %v196_v54 = vadd.f32 %v1733_v50, %v117_v51 }
 0x12a   :  { %v190_v52 = vpop.f32.mrf.mxu0 }
 0x12b   :  { %v191_v53 = vadd.f32 %v190_v52, %v117_v51  ;;  %v202_v56 = vsel %vm72_vm0, %v196_v54, 0.0 }
 0x12d   :  { %v199_v55 = vsel %vm72_vm0, %v191_v53, 0.0 }
 0x12e   :  { %200 = vadd.xlane.f32.xlu0 %v199_v55 }
 0x132   :  { %203 = vadd.xlane.f32.xlu0 %v202_v56 }
 0x148   :  { %362 = vrot.lane.b32.xlu0 %v60_v48, %s2040_s0 }
 0x1b7   :  { %v201_v60 = vpop.xlane.xlu0 %200 }
 0x1b8   :  { %v206_v61 = vmul.f32 0.03125, %v201_v60 }
 0x1ba   :  { %v2135_v62 = vsub.f32 %v191_v53, %v206_v61 }
 0x1bb   :  { %v204_v63 = vpop.xlane.xlu0 %203 }
 0x1bc   :  { %v207_v0 = vmul.f32 0.03125, %v204_v63  ;;  %v210_v1 = vmul.f32 %v2135_v62, %v2135_v62 }
 0x1be   :  { %v2139_v2 = vsub.f32 %v196_v54, %v207_v0  ;;  %v212_v3 = vsel %vm72_vm0, %v210_v1, 0.0 }
 0x1bf   :  { %213 = vadd.xlane.f32.xlu1 %v212_v3  ;;  %v2142_v4 = vpop.permute.xlu0 %362 }
 0x1c0   :  { %v211_v6 = vmul.f32 %v2139_v2, %v2139_v2  ;;  %1750 = vmatpush3.msra.mxu0 %v2142_v4 }
 0x1c1   :  { %1751 = vmatprep.subr.mxu0 %v2042_v58 }
 0x1c2   :  { %v215_v8 = vsel %vm72_vm0, %v211_v6, 0.0  ;;  %1752 = vmatpush3.msra.mxu0 %v2144_v5 }
 0x1c3   :  { %216 = vadd.xlane.f32.xlu0 %v215_v8  ;;  %1767 = vmatprep.subr.mxu0 %v2042_v58 }
 0x1c4   :  { %1754 = vmatmul.mubr.f32.vlgmr.msra.gmra.mxu0 %v2042_v58 }
 0x1c5   :  { %1768 = vmatpush3.msra.mxu0 %v2124_v57  ;;  %1775 = vmatprep.mubr.msk.f32.mxu0 %vm2043_vm1, %v2042_v58 }
 0x1c6   :  { %1769 = vmatprep.subr.mxu0 %v2042_v58 }
 0x1c7   :  { %1770 = vmatpush3.msra.mxu0 %v2129_v59 }
 0x1c8   :  { %1771 = vmatprep.subr.mxu0 %v2042_v58 }
 0x1c9   :  { %1772 = vmatpush3.msra.mxu0 %v2142_v4 }
 0x1ca   :  { %1773 = vmatprep.subr.mxu0 %v2042_v58 }
 0x1cb   :  { %1774 = vmatpush3.msra.mxu0 %v2144_v5 }
 0x1cc   :  { %1789 = vmatprep.subr.mxu0 %v2042_v58 }
 0x1d0   :  { %250 = vrot.lane.b32.xlu1 %v2084_v7, %s2041_s2 }
 0x1d9   :  { %264 = vrot.lane.b32.xlu0 %v2104_v45, %s2041_s2 }
 0x1dd   :  { %252 = vrot.lane.b32.xlu0 %v57_v47, %s2041_s2  ;;  %v241_v47 = vrot.slane %v69_v34, %v104_v33 }
 0x248   :  { %v214_v14 = vpop.xlane.xlu1 %213 }
 0x249   :  { %v218_v15 = vmul.f32 0.03125, %v214_v14 }
 0x24b   :  { %v220_v16 = vadd.f32 1e-05, %v218_v15 }
 0x24c   :  { %v217_v17 = vpop.xlane.xlu0 %216  ;;  %v251_v21 = vpop.permute.xlu1 %250 }
 0x24d   :  { %1869 = vrsqrt.f32 %v220_v16  ;;  %v219_v18 = vmul.f32 0.03125, %v217_v17 }
 0x24f   :  { %v221_v19 = vadd.f32 1e-05, %v219_v18 }
 0x250   :  { %v265_v20 = vpop.permute.xlu0 %264 }
 0x251   :  { %1871 = vrsqrt.f32 %v221_v19  ;;  %v270_v7 = vsel %vm266_vm2, %v263_v9, %v265_v20 }
 0x252   :  { %1734 = vmatprep.subr.mxu1 %v270_v7 }
 0x253   :  { %1735 = vmatpush3.msra.mxu1 %v270_v7 }
 0x254   :  { %1736 = vmatprep.subr.mxu1 %v269_v22  ;;  %v253_v23 = vpop.permute.xlu0 %252 }
 0x255   :  { %1737 = vmatpush3.msra.mxu1 %v269_v22  ;;  %v267_v26 = vsel %vm266_vm2, %v251_v21, %v253_v23 }
 0x256   :  { %1738 = vmatprep.subr.mxu1 %v268_v24 }
 0x257   :  { %1739 = vmatpush3.msra.mxu1 %v268_v24 }
 0x258   :  { %1740 = vmatprep.subr.mxu1 %v267_v26 }
 0x259   :  { %1741 = vmatpush3.msra.mxu1 %v267_v26 }
 0x25a   :  { %v1870_v29 = vpop.eup %1869  ;;  %1756 = vmatprep.subr.mxu1 %v2042_v58 }
 0x25b   :  { %v224_v30 = vmul.f32 %v1870_v29, %v2135_v62 }
 0x25d   :  { %v230_v36 = vmul.f32 %v229_v28, %v224_v30 }
 0x25e   :  { %v1872_v37 = vpop.eup %1871 }
 0x25f   :  { %v225_v38 = vmul.f32 %v1872_v37, %v2139_v2  ;;  %v236_v39 = vadd.f32 %v235_v31, %v230_v36 }
 0x261   :  { %v231_v40 = vmul.f32 %v229_v28, %v225_v38  ;;  %1742 = vmatprep.mubr.msk.f32.mxu1 %vm72_vm0, %v236_v39 }
 0x263   :  { %v237_v41 = vadd.f32 %v235_v31, %v231_v40 }
 0x265   :  { %1743 = vmatmul.mubr.msk.f32.vlgmr.msra.gmra.mxu1 %vm72_vm0, %v237_v41 }
 0x266   :  { %1757 = vmatpush3.msra.mxu1 %v2124_v57  ;;  %1764 = vmatprep.mubr.msk.f32.mxu1 %vm2043_vm1, %v2042_v58 }
 0x267   :  { %1758 = vmatprep.subr.mxu1 %v2042_v58 }
 0x268   :  { %1759 = vmatpush3.msra.mxu1 %v2129_v59 }
 0x269   :  { %1760 = vmatprep.subr.mxu1 %v2042_v58 }
 0x26a   :  { %1761 = vmatpush3.msra.mxu1 %v2142_v4 }
 0x26b   :  { %1762 = vmatprep.subr.mxu1 %v2042_v58 }
 0x26c   :  { %1763 = vmatpush3.msra.mxu1 %v2144_v5 }
 0x26d   :  { %1778 = vmatprep.subr.mxu1 %v2042_v58 }
 0x284   :  { %v441_v43 = vpop.f32.mrf.mxu0 }
 0x285   :  { %v442_v44 = vadd.f32 %v441_v43, %v2190_v42 }
 0x286   :  { %v1755_v45 = vpop.f32.mrf.mxu0 }
 0x287   :  { %459 = vrot.lane.b32.xlu0 %v442_v44, %s2041_s2  ;;  %v446_v46 = vrot.slane %v442_v44, 1 }
 0x289   :  { %461 = vrot.lane.b32.xlu1 %v446_v46, %s2041_s2 }
 0x2f9   :  { %v460_v2 = vpop.permute.xlu0 %459 }
 0x2fb   :  { %v462_v62 = vpop.permute.xlu1 %461 }
 0x325   :  { %v1744_v48 = vpop.f32.mrf.mxu1 }
 0x326   :  { %v2197_v50 = vadd.f32 %v1744_v48, %v241_v47 }
 0x327   :  { %v347_v51 = vpop.f32.mrf.mxu1 }
 0x328   :  { %v2199_v52 = vadd.f32 %v347_v51, %v241_v47  ;;  %v450_v35 = vadd.f32 %v446_v46, %v2197_v50 }
 0x32a   :  { %v449_v53 = vadd.f32 %v442_v44, %v2199_v52  ;;  %v452_v54 = vmul.f32 0.5, %v450_v35 }
 0x32c   :  { %v451_v55 = vmul.f32 0.5, %v449_v53  ;;  %1873 = vtanh.f32 %v452_v54 }
 0x32e   :  { %1875 = vtanh.f32 %v451_v55 }
 0x339   :  { %v1874_v56 = vpop.eup %1873 }
 0x33a   :  { %v456_v60 = vadd.f32 1.0, %v1874_v56 }
 0x33b   :  { %v1876_v61 = vpop.eup %1875 }
 0x33c   :  { %v455_v63 = vadd.f32 1.0, %v1876_v61  ;;  %v458_v33 = vmul.f32 0.5, %v456_v60 }
 0x33e   :  { %v457_v0 = vmul.f32 0.5, %v455_v63  ;;  %v466_v1 = vmul.f32 %v462_v62, %v458_v33  ;;  %v480_v13 = vsub.f32 1.0, %v458_v33  ;;  %v492_v15 = vmul.f32 0.0, %v458_v33 }
 0x340   :  { %v465_v3 = vmul.f32 %v460_v2, %v457_v0  ;;  %471 = vrot.lane.b32.xlu1 %v466_v1, %s2041_s2  ;;  %v479_v17 = vsub.f32 1.0, %v457_v0  ;;  %v491_v20 = vmul.f32 0.0, %v457_v0 }
 0x342   :  { %469 = vrot.lane.b32.xlu0 %v465_v3, %s2041_s2 }
 0x3b2   :  { %v472_v6 = vpop.permute.xlu1 %471 }
 0x3b3   :  { %v476_v8 = vadd.f32 %v472_v6, %v2197_v50 }
 0x3b4   :  { %v470_v9 = vpop.permute.xlu0 %469 }
 0x3b5   :  { %1877 = vtanh.f32 %v476_v8  ;;  %v475_v10 = vadd.f32 %v470_v9, %v2199_v52 }
 0x3b7   :  { %1879 = vtanh.f32 %v475_v10 }
 0x3c2   :  { %v1878_v11 = vpop.eup %1877 }
 0x3c3   :  { %485 = vrot.lane.b32.xlu1 %v1878_v11, %s2040_s0 }
 0x3c4   :  { %v1880_v12 = vpop.eup %1879 }
 0x3c5   :  { %483 = vrot.lane.b32.xlu0 %v1880_v12, %s2040_s0 }
 0x435   :  { %v486_v14 = vpop.permute.xlu1 %485 }
 0x436   :  { %v490_v16 = vmul.f32 %v486_v14, %v480_v13 }
 0x437   :  { %v484_v18 = vpop.permute.xlu0 %483 }
 0x438   :  { %v494_v19 = vadd.f32 %v492_v15, %v490_v16  ;;  %v489_v7 = vmul.f32 %v484_v18, %v479_v17 }
 0x43a   :  { %v497_v21 = vrot.slane %v494_v19, 7  ;;  %v493_v22 = vadd.f32 %v491_v20, %v489_v7 }
 0x43c   :  { %v499_v23 = vsel %vm498_vm3, %v497_v21, %v493_v22  ;;  %v620_v56 = vrot.slane %v493_v22, 7 }
 0x43d   :  { %500 = vrot.lane.b32.xlu1 %v499_v23, %s2040_s0 }
 0x4af   :  { %v501_v24 = vpop.permute.xlu1 %500 }
 0x4b0   :  { %1765 = vmatmul.mubr.msk.f32.vlgmr.msra.gmra.mxu1 %vm72_vm0, %v501_v24 }
 0x4b1   :  { %1779 = vmatpush3.msra.mxu1 %v2124_v57  ;;  %1786 = vmatprep.mubr.msk.f32.mxu1 %vm2043_vm1, %v2042_v58 }
 0x4b2   :  { %1780 = vmatprep.subr.mxu1 %v2042_v58 }
 0x4b3   :  { %1781 = vmatpush3.msra.mxu1 %v2129_v59 }
 0x4b4   :  { %1782 = vmatprep.subr.mxu1 %v2042_v58 }
 0x4b5   :  { %1783 = vmatpush3.msra.mxu1 %v2142_v4 }
 0x4b6   :  { %1784 = vmatprep.subr.mxu1 %v2042_v58 }
 0x4b7   :  { %1785 = vmatpush3.msra.mxu1 %v2144_v5 }
 0x4b8   :  { %1800 = vmatprep.subr.mxu1 %v2042_v58 }
 0x570   :  { %v570_v25 = vpop.f32.mrf.mxu1 }
 0x571   :  { %v571_v26 = vadd.f32 %v570_v25, %v2190_v42 }
 0x572   :  { %v1766_v27 = vpop.f32.mrf.mxu1 }
 0x573   :  { %590 = vrot.lane.b32.xlu1 %v571_v26, %s2041_s2  ;;  %v575_v28 = vrot.slane %v571_v26, 7  ;;  %v579_v29 = vadd.f32 %v571_v26, %v2197_v50 }
 0x575   :  { %588 = vrot.lane.b32.xlu0 %v575_v28, %s2041_s2  ;;  %v578_v30 = vadd.f32 %v575_v28, %v2199_v52  ;;  %v581_v31 = vmul.f32 0.5, %v579_v29 }
 0x577   :  { %v580_v36 = vmul.f32 0.5, %v578_v30  ;;  %1881 = vtanh.f32 %v581_v31 }
 0x579   :  { %1883 = vtanh.f32 %v580_v36 }
 0x584   :  { %v1882_v37 = vpop.eup %1881 }
 0x585   :  { %v585_v39 = vadd.f32 1.0, %v1882_v37 }
 0x586   :  { %v1884_v38 = vpop.eup %1883 }
 0x587   :  { %v584_v40 = vadd.f32 1.0, %v1884_v38  ;;  %v587_v41 = vmul.f32 0.5, %v585_v39 }
 0x589   :  { %v586_v44 = vmul.f32 0.5, %v584_v40  ;;  %v609_v60 = vsub.f32 1.0, %v587_v41  ;;  %v624_v1 = vmul.f32 %v587_v41, %v497_v21 }
 0x58b   :  { %v608_v61 = vsub.f32 1.0, %v586_v44  ;;  %v623_v33 = vmul.f32 %v620_v56, %v586_v44 }
 0x5e5   :  { %v591_v34 = vpop.permute.xlu1 %590 }
 0x5e6   :  { %v595_v43 = vmul.f32 %v591_v34, %v587_v41 }
 0x5e7   :  { %v589_v45 = vpop.permute.xlu0 %588 }
 0x5e8   :  { %v594_v46 = vmul.f32 %v589_v45, %v586_v44  ;;  %600 = vrot.lane.b32.xlu1 %v595_v43, %s2041_s2 }
 0x5ea   :  { %598 = vrot.lane.b32.xlu0 %v594_v46, %s2041_s2 }
 0x65a   :  { %v601_v47 = vpop.permute.xlu1 %600 }
 0x65b   :  { %v605_v48 = vadd.f32 %v601_v47, %v2197_v50 }
 0x65c   :  { %v599_v51 = vpop.permute.xlu0 %598 }
 0x65d   :  { %1885 = vtanh.f32 %v605_v48  ;;  %v604_v35 = vadd.f32 %v599_v51, %v2199_v52 }
 0x65f   :  { %1887 = vtanh.f32 %v604_v35 }
 0x66a   :  { %v1886_v53 = vpop.eup %1885 }
 0x66b   :  { %614 = vrot.lane.b32.xlu1 %v1886_v53, %s2040_s0 }
 0x66c   :  { %v1888_v54 = vpop.eup %1887 }
 0x66d   :  { %612 = vrot.lane.b32.xlu0 %v1888_v54, %s2040_s0 }
 0x6dd   :  { %v615_v55 = vpop.permute.xlu1 %614 }
 0x6de   :  { %v619_v63 = vmul.f32 %v615_v55, %v609_v60 }
 0x6df   :  { %v613_v62 = vpop.permute.xlu0 %612 }
 0x6e0   :  { %v618_v0 = vmul.f32 %v613_v62, %v608_v61  ;;  %v626_v3 = vadd.f32 %v624_v1, %v619_v63 }
 0x6e2   :  { %v625_v2 = vadd.f32 %v623_v33, %v618_v0  ;;  %v753_v38 = vrot.slane %v626_v3, 7 }
 0x6e4   :  { %v629_v6 = vrot.slane %v625_v2, 1  ;;  %v752_v40 = vrot.slane %v625_v2, 7 }
 0x6e6   :  { %v630_v8 = vsel %vm498_vm3, %v626_v3, %v629_v6 }
 0x6e7   :  { %631 = vrot.lane.b32.xlu0 %v630_v8, %s2040_s0 }
 0x759   :  { %v632_v9 = vpop.permute.xlu0 %631 }
 0x75a   :  { %1776 = vmatmul.mubr.msk.f32.vlgmr.msra.gmra.mxu0 %vm72_vm0, %v632_v9 }
 0x75b   :  { %1790 = vmatpush3.msra.mxu0 %v2124_v57  ;;  %1797 = vmatprep.mubr.msk.f32.mxu0 %vm2043_vm1, %v2042_v58 }
 0x75c   :  { %1791 = vmatprep.subr.mxu0 %v2042_v58 }
 0x75d   :  { %1792 = vmatpush3.msra.mxu0 %v2129_v59 }
 0x75e   :  { %1793 = vmatprep.subr.mxu0 %v2042_v58 }
 0x75f   :  { %1794 = vmatpush3.msra.mxu0 %v2142_v4 }
 0x760   :  { %1795 = vmatprep.subr.mxu0 %v2042_v58 }
 0x761   :  { %1796 = vmatpush3.msra.mxu0 %v2144_v5 }
 0x762   :  { %1811 = vmatprep.subr.mxu0 %v2042_v58 }
 0x81a   :  { %v701_v10 = vpop.f32.mrf.mxu0 }
 0x81b   :  { %v702_v11 = vadd.f32 %v701_v10, %v2190_v42 }
 0x81c   :  { %v1777_v12 = vpop.f32.mrf.mxu0 }
 0x81d   :  { %v706_v13 = vrot.slane %v702_v11, 6  ;;  %v707_v14 = vrot.slane %v702_v11, 7 }
 0x81f   :  { %722 = vrot.lane.b32.xlu0 %v707_v14, %s2041_s2  ;;  %720 = vrot.lane.b32.xlu1 %v706_v13, %s2041_s2  ;;  %v710_v15 = vadd.f32 %v706_v13, %v2199_v52  ;;  %v711_v16 = vadd.f32 %v707_v14, %v2197_v50 }
 0x821   :  { %v712_v17 = vmul.f32 0.5, %v710_v15  ;;  %v713_v18 = vmul.f32 0.5, %v711_v16 }
 0x823   :  { %1889 = vtanh.f32 %v712_v17 }
 0x824   :  { %1891 = vtanh.f32 %v713_v18 }
 0x830   :  { %v1890_v19 = vpop.eup %1889 }
 0x831   :  { %v1892_v20 = vpop.eup %1891  ;;  %v716_v21 = vadd.f32 1.0, %v1890_v19 }
 0x832   :  { %v717_v7 = vadd.f32 1.0, %v1892_v20 }
 0x833   :  { %v718_v23 = vmul.f32 0.5, %v716_v21 }
 0x834   :  { %v719_v22 = vmul.f32 0.5, %v717_v7 }
 0x835   :  { %v740_v34 = vsub.f32 1.0, %v718_v23  ;;  %v756_v46 = vmul.f32 %v752_v40, %v718_v23 }
 0x836   :  { %v741_v39 = vsub.f32 1.0, %v719_v22  ;;  %v757_v43 = vmul.f32 %v753_v38, %v719_v22 }
 0x891   :  { %v723_v24 = vpop.permute.xlu0 %722  ;;  %v721_v25 = vpop.permute.xlu1 %720 }
 0x892   :  { %v727_v26 = vmul.f32 %v723_v24, %v719_v22  ;;  %v726_v27 = vmul.f32 %v721_v25, %v718_v23 }
 0x894   :  { %732 = vrot.lane.b32.xlu0 %v727_v26, %s2041_s2  ;;  %730 = vrot.lane.b32.xlu1 %v726_v27, %s2041_s2 }
 0x906   :  { %v733_v28 = vpop.permute.xlu0 %732  ;;  %v731_v29 = vpop.permute.xlu1 %730 }
 0x907   :  { %v737_v30 = vadd.f32 %v733_v28, %v2197_v50  ;;  %v736_v31 = vadd.f32 %v731_v29, %v2199_v52 }
 0x909   :  { %1893 = vtanh.f32 %v737_v30 }
 0x90a   :  { %1895 = vtanh.f32 %v736_v31 }
 0x916   :  { %v1894_v36 = vpop.eup %1893 }
 0x917   :  { %v1896_v37 = vpop.eup %1895  ;;  %746 = vrot.lane.b32.xlu0 %v1894_v36, %s2040_s0 }
 0x918   :  { %744 = vrot.lane.b32.xlu1 %v1896_v37, %s2040_s0 }
 0x989   :  { %v747_v41 = vpop.permute.xlu0 %746 }
 0x98a   :  { %v751_v44 = vmul.f32 %v747_v41, %v741_v39  ;;  %v745_v45 = vpop.permute.xlu1 %744 }
 0x98b   :  { %v750_v47 = vmul.f32 %v745_v45, %v740_v34 }
 0x98c   :  { %v759_v48 = vadd.f32 %v757_v43, %v751_v44 }
 0x98d   :  { %v758_v51 = vadd.f32 %v756_v46, %v750_v47 }
 0x98e   :  { %v763_v35 = vrot.slane %v759_v48, 1  ;;  %v887_v21 = vrot.slane %v759_v48, 7 }
 0x98f   :  { %v762_v53 = vrot.slane %v758_v51, 2  ;;  %v886_v23 = vrot.slane %v758_v51, 7 }
 0x991   :  { %v764_v54 = vsel %vm498_vm3, %v763_v35, %v762_v53 }
 0x992   :  { %765 = vrot.lane.b32.xlu1 %v764_v54, %s2040_s0 }
 0xa04   :  { %v766_v55 = vpop.permute.xlu1 %765 }
 0xa05   :  { %1787 = vmatmul.mubr.msk.f32.vlgmr.msra.gmra.mxu1 %vm72_vm0, %v766_v55 }
 0xa06   :  { %1801 = vmatpush3.msra.mxu1 %v2124_v57  ;;  %1808 = vmatprep.mubr.msk.f32.mxu1 %vm2043_vm1, %v2042_v58 }
 0xa07   :  { %1802 = vmatprep.subr.mxu1 %v2042_v58 }
 0xa08   :  { %1803 = vmatpush3.msra.mxu1 %v2129_v59 }
 0xa09   :  { %1804 = vmatprep.subr.mxu1 %v2042_v58 }
 0xa0a   :  { %1805 = vmatpush3.msra.mxu1 %v2142_v4 }
 0xa0b   :  { %1806 = vmatprep.subr.mxu1 %v2042_v58 }
 0xa0c   :  { %1807 = vmatpush3.msra.mxu1 %v2144_v5 }
 0xa0d   :  { %1822 = vmatprep.subr.mxu1 %v2042_v58 }
 0xac5   :  { %v835_v56 = vpop.f32.mrf.mxu1 }
 0xac6   :  { %v836_v60 = vadd.f32 %v835_v56, %v2190_v42 }
 0xac7   :  { %v1788_v61 = vpop.f32.mrf.mxu1 }
 0xac8   :  { %v840_v62 = vrot.slane %v836_v60, 5  ;;  %v841_v63 = vrot.slane %v836_v60, 6 }
 0xaca   :  { %856 = vrot.lane.b32.xlu1 %v841_v63, %s2041_s2  ;;  %854 = vrot.lane.b32.xlu0 %v840_v62, %s2041_s2  ;;  %v844_v33 = vadd.f32 %v840_v62, %v2199_v52  ;;  %v845_v0 = vadd.f32 %v841_v63, %v2197_v50 }
 0xacc   :  { %v846_v1 = vmul.f32 0.5, %v844_v33  ;;  %v847_v2 = vmul.f32 0.5, %v845_v0 }
 0xace   :  { %1897 = vtanh.f32 %v846_v1 }
 0xacf   :  { %1899 = vtanh.f32 %v847_v2 }
 0xadb   :  { %v1898_v3 = vpop.eup %1897 }
 0xadc   :  { %v1900_v6 = vpop.eup %1899  ;;  %v850_v9 = vadd.f32 1.0, %v1898_v3 }
 0xadd   :  { %v851_v8 = vadd.f32 1.0, %v1900_v6 }
 0xade   :  { %v852_v11 = vmul.f32 0.5, %v850_v9 }
 0xadf   :  { %v853_v10 = vmul.f32 0.5, %v851_v8 }
 0xae0   :  { %v874_v25 = vsub.f32 1.0, %v852_v11  ;;  %v890_v29 = vmul.f32 %v886_v23, %v852_v11 }
 0xae1   :  { %v875_v22 = vsub.f32 1.0, %v853_v10  ;;  %v891_v26 = vmul.f32 %v887_v21, %v853_v10 }
 0xb3c   :  { %v857_v12 = vpop.permute.xlu1 %856  ;;  %v855_v13 = vpop.permute.xlu0 %854 }
 0xb3d   :  { %v861_v14 = vmul.f32 %v857_v12, %v853_v10  ;;  %v860_v15 = vmul.f32 %v855_v13, %v852_v11 }
 0xb3f   :  { %866 = vrot.lane.b32.xlu1 %v861_v14, %s2041_s2  ;;  %864 = vrot.lane.b32.xlu0 %v860_v15, %s2041_s2 }
 0xbb1   :  { %v867_v16 = vpop.permute.xlu1 %866  ;;  %v865_v17 = vpop.permute.xlu0 %864 }
 0xbb2   :  { %v871_v18 = vadd.f32 %v867_v16, %v2197_v50  ;;  %v870_v19 = vadd.f32 %v865_v17, %v2199_v52 }
 0xbb4   :  { %1901 = vtanh.f32 %v871_v18 }
 0xbb5   :  { %1903 = vtanh.f32 %v870_v19 }
 0xbc1   :  { %v1902_v20 = vpop.eup %1901 }
 0xbc2   :  { %v1904_v7 = vpop.eup %1903  ;;  %880 = vrot.lane.b32.xlu1 %v1902_v20, %s2040_s0 }
 0xbc3   :  { %878 = vrot.lane.b32.xlu0 %v1904_v7, %s2040_s0 }
 0xc34   :  { %v881_v24 = vpop.permute.xlu1 %880 }
 0xc35   :  { %v885_v27 = vmul.f32 %v881_v24, %v875_v22  ;;  %v879_v28 = vpop.permute.xlu0 %878 }
 0xc36   :  { %v884_v30 = vmul.f32 %v879_v28, %v874_v25 }
 0xc37   :  { %v893_v31 = vadd.f32 %v891_v26, %v885_v27 }
 0xc38   :  { %v892_v36 = vadd.f32 %v890_v29, %v884_v30 }
 0xc39   :  { %v897_v37 = vrot.slane %v893_v31, 2  ;;  %v1021_v9 = vrot.slane %v893_v31, 7 }
 0xc3a   :  { %v896_v38 = vrot.slane %v892_v36, 3  ;;  %v1020_v11 = vrot.slane %v892_v36, 7 }
 0xc3c   :  { %v898_v39 = vsel %vm498_vm3, %v897_v37, %v896_v38 }
 0xc3d   :  { %899 = vrot.lane.b32.xlu0 %v898_v39, %s2040_s0 }
 0xcaf   :  { %v900_v40 = vpop.permute.xlu0 %899 }
 0xcb0   :  { %1798 = vmatmul.mubr.msk.f32.vlgmr.msra.gmra.mxu0 %vm72_vm0, %v900_v40 }
 0xcb1   :  { %1812 = vmatpush3.msra.mxu0 %v2124_v57  ;;  %1819 = vmatprep.mubr.msk.f32.mxu0 %vm2043_vm1, %v2042_v58 }
 0xcb2   :  { %1813 = vmatprep.subr.mxu0 %v2042_v58 }
 0xcb3   :  { %1814 = vmatpush3.msra.mxu0 %v2129_v59 }
 0xcb4   :  { %1815 = vmatprep.subr.mxu0 %v2042_v58 }
 0xcb5   :  { %1816 = vmatpush3.msra.mxu0 %v2142_v4 }
 0xcb6   :  { %1817 = vmatprep.subr.mxu0 %v2042_v58 }
 0xcb7   :  { %1818 = vmatpush3.msra.mxu0 %v2144_v5 }
 0xcb8   :  { %1833 = vmatprep.subr.mxu0 %v2042_v58 }
 0xd70   :  { %v969_v41 = vpop.f32.mrf.mxu0 }
 0xd71   :  { %v970_v34 = vadd.f32 %v969_v41, %v2190_v42 }
 0xd72   :  { %v1799_v43 = vpop.f32.mrf.mxu0 }
 0xd73   :  { %v974_v44 = vrot.slane %v970_v34, 4  ;;  %v975_v45 = vrot.slane %v970_v34, 5 }
 0xd75   :  { %990 = vrot.lane.b32.xlu0 %v975_v45, %s2041_s2  ;;  %988 = vrot.lane.b32.xlu1 %v974_v44, %s2041_s2  ;;  %v978_v46 = vadd.f32 %v974_v44, %v2199_v52  ;;  %v979_v47 = vadd.f32 %v975_v45, %v2197_v50 }
 0xd77   :  { %v980_v48 = vmul.f32 0.5, %v978_v46  ;;  %v981_v51 = vmul.f32 0.5, %v979_v47 }
 0xd79   :  { %1905 = vtanh.f32 %v980_v48 }
 0xd7a   :  { %1907 = vtanh.f32 %v981_v51 }
 0xd86   :  { %v1906_v35 = vpop.eup %1905 }
 0xd87   :  { %v1908_v53 = vpop.eup %1907  ;;  %v984_v55 = vadd.f32 1.0, %v1906_v35 }
 0xd88   :  { %v985_v54 = vadd.f32 1.0, %v1908_v53 }
 0xd89   :  { %v986_v60 = vmul.f32 0.5, %v984_v55 }
 0xd8a   :  { %v987_v56 = vmul.f32 0.5, %v985_v54 }
 0xd8b   :  { %v1008_v13 = vsub.f32 1.0, %v986_v60  ;;  %v1024_v17 = vmul.f32 %v1020_v11, %v986_v60 }
 0xd8c   :  { %v1009_v10 = vsub.f32 1.0, %v987_v56  ;;  %v1025_v14 = vmul.f32 %v1021_v9, %v987_v56 }
 0xde7   :  { %v991_v61 = vpop.permute.xlu0 %990  ;;  %v989_v62 = vpop.permute.xlu1 %988 }
 0xde8   :  { %v995_v63 = vmul.f32 %v991_v61, %v987_v56  ;;  %v994_v33 = vmul.f32 %v989_v62, %v986_v60 }
 0xdea   :  { %1000 = vrot.lane.b32.xlu0 %v995_v63, %s2041_s2  ;;  %998 = vrot.lane.b32.xlu1 %v994_v33, %s2041_s2 }
 0xe5c   :  { %v1001_v0 = vpop.permute.xlu0 %1000  ;;  %v999_v1 = vpop.permute.xlu1 %998 }
 0xe5d   :  { %v1005_v2 = vadd.f32 %v1001_v0, %v2197_v50  ;;  %v1004_v3 = vadd.f32 %v999_v1, %v2199_v52 }
 0xe5f   :  { %1909 = vtanh.f32 %v1005_v2 }
 0xe60   :  { %1911 = vtanh.f32 %v1004_v3 }
 0xe6c   :  { %v1910_v6 = vpop.eup %1909 }
 0xe6d   :  { %v1912_v8 = vpop.eup %1911  ;;  %1014 = vrot.lane.b32.xlu0 %v1910_v6, %s2040_s0 }
 0xe6e   :  { %1012 = vrot.lane.b32.xlu1 %v1912_v8, %s2040_s0 }
 0xedf   :  { %v1015_v12 = vpop.permute.xlu0 %1014 }
 0xee0   :  { %v1019_v15 = vmul.f32 %v1015_v12, %v1009_v10  ;;  %v1013_v16 = vpop.permute.xlu1 %1012 }
 0xee1   :  { %v1018_v18 = vmul.f32 %v1013_v16, %v1008_v13 }
 0xee2   :  { %v1027_v19 = vadd.f32 %v1025_v14, %v1019_v15 }
 0xee3   :  { %v1026_v20 = vadd.f32 %v1024_v17, %v1018_v18 }
 0xee4   :  { %v1031_v7 = vrot.slane %v1027_v19, 3  ;;  %v1155_v51 = vrot.slane %v1027_v19, 7 }
 0xee5   :  { %v1030_v21 = vrot.slane %v1026_v20, 4  ;;  %v1154_v53 = vrot.slane %v1026_v20, 7 }
 0xee7   :  { %v1032_v22 = vsel %vm498_vm3, %v1031_v7, %v1030_v21 }
 0xee8   :  { %1033 = vrot.lane.b32.xlu1 %v1032_v22, %s2040_s0 }
 0xf5a   :  { %v1034_v23 = vpop.permute.xlu1 %1033 }
 0xf5b   :  { %1809 = vmatmul.mubr.msk.f32.vlgmr.msra.gmra.mxu1 %vm72_vm0, %v1034_v23 }
 0xf5c   :  { %1823 = vmatpush3.msra.mxu1 %v2124_v57  ;;  %1830 = vmatprep.mubr.msk.f32.mxu1 %vm2043_vm1, %v2042_v58 }
 0xf5d   :  { %1824 = vmatprep.subr.mxu1 %v2042_v58 }
 0xf5e   :  { %1825 = vmatpush3.msra.mxu1 %v2129_v59 }
 0xf5f   :  { %1826 = vmatprep.subr.mxu1 %v2042_v58 }
 0xf60   :  { %1827 = vmatpush3.msra.mxu1 %v2142_v4 }
 0xf61   :  { %1828 = vmatprep.subr.mxu1 %v2042_v58 }
 0xf62   :  { %1829 = vmatpush3.msra.mxu1 %v2144_v5 }
 0xf63   :  { %1844 = vmatprep.subr.mxu1 %v2042_v58 }
0x101b   :  { %v1103_v24 = vpop.f32.mrf.mxu1 }
0x101c   :  { %v1104_v57 = vadd.f32 %v1103_v24, %v2190_v42 }
0x101d   :  { %v1810_v25 = vpop.f32.mrf.mxu1 }
0x101e   :  { %v1108_v26 = vrot.slane %v1104_v57, 3  ;;  %v1109_v27 = vrot.slane %v1104_v57, 4 }
0x1020   :  { %1124 = vrot.lane.b32.xlu1 %v1109_v27, %s2041_s2  ;;  %1122 = vrot.lane.b32.xlu0 %v1108_v26, %s2041_s2  ;;  %v1112_v59 = vadd.f32 %v1108_v26, %v2199_v52  ;;  %v1113_v4 = vadd.f32 %v1109_v27, %v2197_v50 }
0x1022   :  { %v1114_v28 = vmul.f32 0.5, %v1112_v59  ;;  %v1115_v29 = vmul.f32 0.5, %v1113_v4 }
0x1024   :  { %1913 = vtanh.f32 %v1114_v28 }
0x1025   :  { %1915 = vtanh.f32 %v1115_v29 }
0x1031   :  { %v1914_v5 = vpop.eup %1913 }
0x1032   :  { %v1916_v30 = vpop.eup %1915  ;;  %v1118_v36 = vadd.f32 1.0, %v1914_v5 }
0x1033   :  { %v1119_v31 = vadd.f32 1.0, %v1916_v30 }
0x1034   :  { %v1120_v38 = vmul.f32 0.5, %v1118_v36 }
0x1035   :  { %v1121_v37 = vmul.f32 0.5, %v1119_v31 }
0x1036   :  { %v1142_v55 = vsub.f32 1.0, %v1120_v38  ;;  %v1158_v62 = vmul.f32 %v1154_v53, %v1120_v38 }
0x1037   :  { %v1143_v35 = vsub.f32 1.0, %v1121_v37  ;;  %v1159_v56 = vmul.f32 %v1155_v51, %v1121_v37 }
0x1092   :  { %v1125_v39 = vpop.permute.xlu1 %1124  ;;  %v1123_v40 = vpop.permute.xlu0 %1122 }
0x1093   :  { %v1129_v41 = vmul.f32 %v1125_v39, %v1121_v37  ;;  %v1128_v34 = vmul.f32 %v1123_v40, %v1120_v38 }
0x1095   :  { %1134 = vrot.lane.b32.xlu1 %v1129_v41, %s2041_s2  ;;  %1132 = vrot.lane.b32.xlu0 %v1128_v34, %s2041_s2 }
0x1107   :  { %v1135_v43 = vpop.permute.xlu1 %1134  ;;  %v1133_v44 = vpop.permute.xlu0 %1132 }
0x1108   :  { %v1139_v45 = vadd.f32 %v1135_v43, %v2197_v50  ;;  %v1138_v46 = vadd.f32 %v1133_v44, %v2199_v52 }
0x110a   :  { %1917 = vtanh.f32 %v1139_v45 }
0x110b   :  { %1919 = vtanh.f32 %v1138_v46 }
0x1117   :  { %v1918_v47 = vpop.eup %1917 }
0x1118   :  { %v1920_v48 = vpop.eup %1919  ;;  %1148 = vrot.lane.b32.xlu1 %v1918_v47, %s2040_s0 }
0x1119   :  { %1146 = vrot.lane.b32.xlu0 %v1920_v48, %s2040_s0 }
0x118a   :  { %v1149_v54 = vpop.permute.xlu1 %1148 }
0x118b   :  { %v1153_v60 = vmul.f32 %v1149_v54, %v1143_v35  ;;  %v1147_v61 = vpop.permute.xlu0 %1146 }
0x118c   :  { %v1152_v63 = vmul.f32 %v1147_v61, %v1142_v55 }
0x118d   :  { %v1161_v33 = vadd.f32 %v1159_v56, %v1153_v60 }
0x118e   :  { %v1160_v0 = vadd.f32 %v1158_v62, %v1152_v63 }
0x118f   :  { %v1165_v1 = vrot.slane %v1161_v33, 4  ;;  %v1289_v29 = vrot.slane %v1161_v33, 7 }
0x1190   :  { %v1164_v2 = vrot.slane %v1160_v0, 5  ;;  %v1288_v30 = vrot.slane %v1160_v0, 7 }
0x1192   :  { %v1166_v3 = vsel %vm498_vm3, %v1165_v1, %v1164_v2 }
0x1193   :  { %1167 = vrot.lane.b32.xlu0 %v1166_v3, %s2040_s0 }
0x1205   :  { %v1168_v6 = vpop.permute.xlu0 %1167 }
0x1206   :  { %1820 = vmatmul.mubr.msk.f32.vlgmr.msra.gmra.mxu0 %vm72_vm0, %v1168_v6 }
0x1207   :  { %1841 = vmatprep.mubr.msk.f32.mxu0 %vm2043_vm1, %v2042_v58 }
0x12c6   :  { %v1237_v8 = vpop.f32.mrf.mxu0 }
0x12c7   :  { %v1238_v9 = vadd.f32 %v1237_v8, %v2190_v42 }
0x12c8   :  { %v1821_v10 = vpop.f32.mrf.mxu0 }
0x12c9   :  { %v1242_v11 = vrot.slane %v1238_v9, 2  ;;  %v1243_v12 = vrot.slane %v1238_v9, 3 }
0x12cb   :  { %1258 = vrot.lane.b32.xlu0 %v1243_v12, %s2041_s2  ;;  %1256 = vrot.lane.b32.xlu1 %v1242_v11, %s2041_s2  ;;  %v1246_v13 = vadd.f32 %v1242_v11, %v2199_v52  ;;  %v1247_v14 = vadd.f32 %v1243_v12, %v2197_v50 }
0x12cd   :  { %v1248_v15 = vmul.f32 0.5, %v1246_v13  ;;  %v1249_v16 = vmul.f32 0.5, %v1247_v14 }
0x12cf   :  { %1921 = vtanh.f32 %v1248_v15  ;;  %v1941_v15 = vld [vmem:[#allocation5 + $0x30] sm:$0xff] }
0x12d0   :  { %1923 = vtanh.f32 %v1249_v16  ;;  %v1942_v16 = vld [vmem:[#allocation5 + $0x48] sm:$0xff] }
0x12dc   :  { %v1922_v17 = vpop.eup %1921 }
0x12dd   :  { %v1924_v18 = vpop.eup %1923  ;;  %v1252_v20 = vadd.f32 1.0, %v1922_v17  ;;  %v1943_v17 = vld [vmem:[#allocation5] sm:$0xff] }
0x12de   :  { %v1253_v19 = vadd.f32 1.0, %v1924_v18 }
0x12df   :  { %v1254_v21 = vmul.f32 0.5, %v1252_v20 }
0x12e0   :  { %v1255_v7 = vmul.f32 0.5, %v1253_v19 }
0x12e1   :  { %v1276_v36 = vsub.f32 1.0, %v1254_v21  ;;  %v1292_v40 = vmul.f32 %v1288_v30, %v1254_v21 }
0x12e2   :  { %v1277_v5 = vsub.f32 1.0, %v1255_v7  ;;  %v1293_v37 = vmul.f32 %v1289_v29, %v1255_v7 }
0x133d   :  { %v1259_v22 = vpop.permute.xlu0 %1258  ;;  %v1257_v23 = vpop.permute.xlu1 %1256 }
0x133e   :  { %v1263_v24 = vmul.f32 %v1259_v22, %v1255_v7  ;;  %v1262_v57 = vmul.f32 %v1257_v23, %v1254_v21 }
0x1340   :  { %1268 = vrot.lane.b32.xlu0 %v1263_v24, %s2041_s2  ;;  %1266 = vrot.lane.b32.xlu1 %v1262_v57, %s2041_s2 }
0x13b2   :  { %v1269_v25 = vpop.permute.xlu0 %1268  ;;  %v1267_v26 = vpop.permute.xlu1 %1266 }
0x13b3   :  { %v1273_v27 = vadd.f32 %v1269_v25, %v2197_v50  ;;  %v1272_v59 = vadd.f32 %v1267_v26, %v2199_v52 }
0x13b5   :  { %1925 = vtanh.f32 %v1273_v27 }
0x13b6   :  { %1927 = vtanh.f32 %v1272_v59 }
0x13c2   :  { %v1926_v4 = vpop.eup %1925 }
0x13c3   :  { %v1928_v28 = vpop.eup %1927  ;;  %1282 = vrot.lane.b32.xlu0 %v1926_v4, %s2040_s0 }
0x13c4   :  { %1280 = vrot.lane.b32.xlu1 %v1928_v28, %s2040_s0 }
0x1435   :  { %v1283_v31 = vpop.permute.xlu0 %1282 }
0x1436   :  { %v1287_v38 = vmul.f32 %v1283_v31, %v1277_v5  ;;  %v1281_v39 = vpop.permute.xlu1 %1280 }
0x1437   :  { %v1286_v41 = vmul.f32 %v1281_v39, %v1276_v36  ;;  %v1432_v36 = vsub.s32 5, %v2090_v32 }
0x1438   :  { %v1295_v34 = vadd.f32 %v1293_v37, %v1287_v38  ;;  %v1945_v37 = vld [vmem:[#allocation7] sm:$0xff] }
0x1439   :  { %v1294_v43 = vadd.f32 %v1292_v40, %v1286_v41  ;;  %v1433_v38 = vrot.slane %v1945_v37, %v1432_v36 }
0x143a   :  { %v1299_v44 = vrot.slane %v1295_v34, 5 }
0x143b   :  { %v1298_v45 = vrot.slane %v1294_v43, 6  ;;  %v1422_v19 = vrot.slane %v1294_v43, 7 }
0x143d   :  { %v1300_v46 = vsel %vm498_vm3, %v1299_v44, %v1298_v45 }
0x143e   :  { %1301 = vrot.lane.b32.xlu1 %v1300_v46, %s2040_s0 }
0x14b0   :  { %v1302_v47 = vpop.permute.xlu1 %1301 }
0x14b1   :  { %1831 = vmatmul.mubr.msk.f32.vlgmr.msra.gmra.mxu1 %vm72_vm0, %v1302_v47 }
0x14b2   :  { %1852 = vmatprep.mubr.msk.f32.mxu1 %vm2043_vm1, %v2042_v58 }
0x1571   :  { %v1371_v48 = vpop.f32.mrf.mxu1 }
0x1572   :  { %v1372_v51 = vadd.f32 %v1371_v48, %v2190_v42  ;;  %v67_v48 = vld [vmem:[#allocation5 + $0x58] sm:$0xff] }
0x1573   :  { %v1832_v35 = vpop.f32.mrf.mxu1  ;;  %1845 = vmatpush3.msra.mxu1 %v67_v48 }
0x1574   :  { %v1376_v53 = vrot.slane %v1372_v51, 1  ;;  %v1377_v54 = vrot.slane %v1372_v51, 2  ;;  %v64_v51 = vld [vmem:[#allocation5 + $0x40] sm:$0xff]  ;;  %1846 = vmatprep.subr.mxu1 %v2042_v58  ;;  %v61_v35 = vld [vmem:[#allocation5 + $0x28] sm:$0xff] }
0x1575   :  { %1847 = vmatpush3.msra.mxu1 %v64_v51 }
0x1576   :  { %1392 = vrot.lane.b32.xlu1 %v1377_v54, %s2041_s2  ;;  %1390 = vrot.lane.b32.xlu0 %v1376_v53, %s2041_s2  ;;  %v1380_v55 = vadd.f32 %v1376_v53, %v2199_v52  ;;  %v1381_v56 = vadd.f32 %v1377_v54, %v2197_v50  ;;  %v58_v53 = vld [vmem:[#allocation5 + $0x10] sm:$0xff] }
0x1577   :  { %1848 = vmatprep.subr.mxu1 %v2042_v58 }
0x1578   :  { %v1382_v60 = vmul.f32 0.5, %v1380_v55  ;;  %v1383_v61 = vmul.f32 0.5, %v1381_v56  ;;  %1849 = vmatpush3.msra.mxu1 %v61_v35 }
0x1579   :  { %1850 = vmatprep.subr.mxu1 %v2042_v58 }
0x157a   :  { %1929 = vtanh.f32 %v1382_v60  ;;  %1851 = vmatpush3.msra.mxu1 %v58_v53  ;;  %v1541_v60 = vsub.s32 6, %v2090_v32 }
0x157b   :  { %1931 = vtanh.f32 %v1383_v61  ;;  %v1546_v61 = vsub.s32 7, %v2090_v32 }
0x1587   :  { %v1930_v62 = vpop.eup %1929 }
0x1588   :  { %v1932_v63 = vpop.eup %1931  ;;  %v1386_v0 = vadd.f32 1.0, %v1930_v62  ;;  %v1542_v62 = vrot.slane %v1945_v37, %v1541_v60 }
0x1589   :  { %v1387_v33 = vadd.f32 1.0, %v1932_v63 }
0x158a   :  { %v1388_v1 = vmul.f32 0.5, %v1386_v0  ;;  %v1547_v0 = vrot.slane %v1945_v37, %v1546_v61 }
0x158b   :  { %v1389_v42 = vmul.f32 0.5, %v1387_v33 }
0x158c   :  { %v1410_v7 = vsub.f32 1.0, %v1388_v1  ;;  %v1426_v24 = vmul.f32 %v1422_v19, %v1388_v1 }
0x158d   :  { %v1411_v18 = vsub.f32 1.0, %v1389_v42 }
0x15e8   :  { %v1393_v2 = vpop.permute.xlu1 %1392  ;;  %v1391_v3 = vpop.permute.xlu0 %1390 }
0x15e9   :  { %v1397_v6 = vmul.f32 %v1393_v2, %v1389_v42  ;;  %v1396_v8 = vmul.f32 %v1391_v3, %v1388_v1 }
0x15eb   :  { %1402 = vrot.lane.b32.xlu1 %v1397_v6, %s2041_s2  ;;  %1400 = vrot.lane.b32.xlu0 %v1396_v8, %s2041_s2 }
0x165d   :  { %v1403_v9 = vpop.permute.xlu1 %1402  ;;  %v1401_v10 = vpop.permute.xlu0 %1400 }
0x165e   :  { %v1407_v11 = vadd.f32 %v1403_v9, %v2197_v50  ;;  %v1406_v12 = vadd.f32 %v1401_v10, %v2199_v52  ;;  %v1944_v50 = vld [vmem:[#allocation5 + $0x18] sm:$0xff]  ;;  %v1423_v52 = vrot.slane %v1295_v34, 7  ;;  %v1946_v9 = vld [vmem:[#allocation7 + $0x8] sm:$0x7] }
0x165f   :  { %v1557_v10 = vrot.slane %v1946_v9, %v116_v49 }
0x1660   :  { %1933 = vtanh.f32 %v1407_v11  ;;  %v1427_v21 = vmul.f32 %v1423_v52, %v1389_v42 }
0x1661   :  { %1935 = vtanh.f32 %v1406_v12 }
0x166d   :  { %v1934_v13 = vpop.eup %1933 }
0x166e   :  { %v1936_v14 = vpop.eup %1935  ;;  %1416 = vrot.lane.b32.xlu1 %v1934_v13, %s2040_s0 }
0x166f   :  { %1414 = vrot.lane.b32.xlu0 %v1936_v14, %s2040_s0 }
0x1672   :  { %1445 = vrot.lane.b32.xlu1 %v1941_v15, %s2040_s0 }
0x1673   :  { %1447 = vrot.lane.b32.xlu0 %v1942_v16, %s2040_s0 }
0x1676   :  { %1441 = vrot.lane.b32.xlu1 %v1943_v17, %s2040_s0 }
0x1677   :  { %1443 = vrot.lane.b32.xlu0 %v1944_v50, %s2040_s0 }
0x16e0   :  { %v1417_v20 = vpop.permute.xlu1 %1416 }
0x16e1   :  { %v1421_v22 = vmul.f32 %v1417_v20, %v1411_v18  ;;  %v1415_v23 = vpop.permute.xlu0 %1414 }
0x16e2   :  { %v1420_v57 = vmul.f32 %v1415_v23, %v1410_v7 }
0x16e3   :  { %v1429_v25 = vadd.f32 %v1427_v21, %v1421_v22 }
0x16e4   :  { %v1428_v26 = vadd.f32 %v1426_v24, %v1420_v57  ;;  %v1446_v27 = vpop.permute.xlu1 %1445 }
0x16e5   :  { %v1437_v59 = vrot.slane %v1429_v25, 6  ;;  %v1448_v4 = vpop.permute.xlu0 %1447 }
0x16e6   :  { %v1436_v28 = vrot.slane %v1428_v26, 7  ;;  %1834 = vmatpush3.msra.mxu0 %v1448_v4 }
0x16e7   :  { %1835 = vmatprep.subr.mxu0 %v2042_v58 }
0x16e8   :  { %v1438_v29 = vsel %vm498_vm3, %v1437_v59, %v1436_v28  ;;  %1836 = vmatpush3.msra.mxu0 %v1446_v27  ;;  %v1442_v30 = vpop.permute.xlu1 %1441 }
0x16e9   :  { %1439 = vrot.lane.b32.xlu0 %v1438_v29, %s2040_s0  ;;  %1837 = vmatprep.subr.mxu0 %v2042_v58  ;;  %v1444_v5 = vpop.permute.xlu0 %1443 }
0x16ea   :  { %1838 = vmatpush3.msra.mxu0 %v1444_v5 }
0x16eb   :  { %1839 = vmatprep.subr.mxu0 %v2042_v58 }
0x16ec   :  { %1840 = vmatpush3.msra.mxu0 %v1442_v30 }
0x175b   :  { %v1440_v31 = vpop.permute.xlu0 %1439 }
0x175c   :  { %1842 = vmatmul.mubr.msk.f32.vlgmr.msra.gmra.mxu0 %vm72_vm0, %v1440_v31 }
0x181c   :  { %v1521_v39 = vpop.f32.mrf.mxu0 }
0x181d   :  { %v1522_v40 = vadd.f32 %v1521_v39, %v1433_v38 }
0x181e   :  { %v1843_v41 = vpop.f32.mrf.mxu0 }
0x181f   :  { %v1526_v34 = vsel %vm1525_vm4, %v1522_v40, 0.0 }
0x1820   :  { %1527 = vadd.xlane.f32.xlu1 %v1526_v34 }
0x18a9   :  { %v1528_v43 = vpop.xlane.xlu1 %1527 }
0x18aa   :  { %v1529_v44 = vmul.f32 0.03125, %v1528_v43 }
0x18ac   :  { %v1530_v45 = vsub.f32 %v1522_v40, %v1529_v44 }
0x18ae   :  { %v1531_v46 = vmul.f32 %v1530_v45, %v1530_v45 }
0x18b0   :  { %v1532_v47 = vsel %vm1525_vm4, %v1531_v46, 0.0 }
0x18b1   :  { %1533 = vadd.xlane.f32.xlu0 %v1532_v47 }
0x193a   :  { %v1534_v54 = vpop.xlane.xlu0 %1533 }
0x193b   :  { %v1535_v55 = vmul.f32 0.03125, %v1534_v54 }
0x193d   :  { %v1536_v56 = vadd.f32 1e-05, %v1535_v55 }
0x193f   :  { %1937 = vrsqrt.f32 %v1536_v56 }
0x194c   :  { %v1938_v63 = vpop.eup %1937 }
0x194d   :  { %v1538_v33 = vmul.f32 %v1938_v63, %v1530_v45 }
0x194f   :  { %v1543_v42 = vmul.f32 %v1542_v62, %v1538_v33 }
0x1951   :  { %v1548_v1 = vadd.f32 %v1547_v0, %v1543_v42 }
0x1953   :  { %v1550_v2 = vmul.f32 0.70710677, %v1548_v1  ;;  %v1549_v6 = vmul.f32 0.5, %v1548_v1 }
0x1955   :  { %1939 = verf.f32 %v1550_v2 }
0x1962   :  { %v1940_v3 = vpop.eup %1939 }
0x1963   :  { %v1552_v58 = vadd.f32 1.0, %v1940_v3 }
0x1965   :  { %v1553_v8 = vmul.f32 %v1552_v58, %v1549_v6 }
0x1967   :  { %1853 = vmatmul.mubr.msk.f32.vlgmr.msra.gmra.mxu1 %vm72_vm0, %v1553_v8 }
0x1a27   :  { %v1627_v11 = vpop.f32.mrf.mxu1 }
0x1a28   :  { %v1628_v12 = vadd.f32 %v1627_v11, %v1557_v10 }
0x1a29   :  { %v1854_v13 = vpop.f32.mrf.mxu1 }
0x1a2a   :  { %1631 = vst [vmem:[#allocation8] sm:$0x3] %v1628_v12 }
0x1a2b   :  { %2018 = shalt.err (!%p2015_p5)
}
0x1a2c   :  { %1641 = dma.vmem_to_hbm [thread:$0]  %s1639_s4, 32, %s2386_s3, [#allocation4]  }
0x1a2d   :  { %2031 = dma.done.wait [#allocation4], 32  }
0x1a2e   :  { %2032 = vsyncadd [#allocation4], 4294967264 }
0x1a2f   :  { %1645 = vsyncpa [#allocation3], 1 }
0x1a30   :  { %1646 = vsyncpa [#allocation6], 1 }
0x1a31   :  { %1647 = vsyncpa [#allocation4], 1 }

</bundles_post_ra>
